<compile_context>
chip_gen: v5e
topology: v5e:2x2
jax: 0.10.0
libtpu: 0.0.40
codegen_flags: <defaults>
</compile_context>

<pallas_src>
import functools

import jax
import jax.numpy as jnp
from jax.experimental import pallas as pl
from jax.experimental.pallas import tpu as pltpu


def _shift_lanes(img, off):
    """shifted[:, i] = img[:, i + off], zero-filled outside [0, L)."""
    if off == 0:
        return img
    C, L = img.shape
    pad = jnp.zeros((C, abs(off)), img.dtype)
    if off > 0:
        return jnp.concatenate([img[:, off:], pad], axis=1)
    return jnp.concatenate([pad, img[:, :off]], axis=1)


def basic_block_kernel(x_ref, w1_ref, b1_ref, w2_ref, b2_ref, o_ref, *, H, W):
    # x_ref : (C, NB*H*W)  bf16  NB images stacked on lanes, channels on sublanes
    # w*_ref: (C, 9*C)     bf16  conv weights with BN scale folded in
    # b*_ref: (C, 1)       f32   folded BN bias
    # o_ref : (C, NB*H*W)  f32
    HW = H * W
    C, L = x_ref.shape
    x = x_ref[...]                        # bf16
    xf = x.astype(jnp.float32)            # identity branch for the residual add

    # Flat lane index -> per-image pixel index -> border-validity masks for the
    # nine conv taps (shared by both convs).
    lane = jax.lax.broadcasted_iota(jnp.int32, (1, L), 1)
    lane_img = (jnp.bitwise_and(lane, HW - 1) if HW & (HW - 1) == 0
                else lane % HW)
    w_idx = (jnp.bitwise_and(lane_img, W - 1) if W & (W - 1) == 0
             else lane_img % W)

    taps = []
    for dh in range(3):
        for dw in range(3):
            oh, ow = dh - 1, dw - 1
            conds = []
            if oh == -1:
                conds.append(lane_img >= W)
            elif oh == 1:
                conds.append(lane_img < (H - 1) * W)
            if ow == -1:
                conds.append(w_idx >= 1)
            elif ow == 1:
                conds.append(w_idx <= W - 2)
            valid = None
            for c in conds:
                valid = c if valid is None else valid & c
            taps.append((oh * W + ow, valid))

    def im2col(img):
        # (C, L) -> (9*C, L); rows ordered (tap, channel) to match w*_ref cols.
        # Taps that would cross an image boundary (images are stacked along the
        # lane axis) always land on a masked-out border position, so a flat
        # lane shift over the whole slab is safe.
        slabs = []
        for off, valid in taps:
            s = _shift_lanes(img, off)
            if valid is not None:
                s = jnp.where(valid, s, jnp.zeros((), img.dtype))
            slabs.append(s)
        return jnp.concatenate(slabs, axis=0)

    # conv1 (+ folded bn1) + bias + ReLU: one (C,9C) @ (9C,L) MXU matmul.
    p1 = im2col(x)
    y1 = jnp.dot(w1_ref[...], p1, preferred_element_type=jnp.float32)
    y1 = jnp.maximum(y1 + b1_ref[...], 0.0)

    # conv2 (+ folded bn2) + bias + identity + ReLU.  The intermediate never
    # leaves VMEM.
    p2 = im2col(y1.astype(jnp.bfloat16))
    y2 = jnp.dot(w2_ref[...], p2, preferred_element_type=jnp.float32)
    o_ref[...] = jnp.maximum(y2 + b2_ref[...] + xf, 0.0)


def fold_bn(gamma, beta, mean, var, eps=1e-5):
    scale = gamma / jnp.sqrt(var + eps)
    bias = beta - mean * scale
    return scale, bias


def basic_block_forward(x_nchw, params, *, max_lanes=4096):
    """Pallas BasicBlock.forward (stride=1, downsample=None, eval-mode BN)."""
    N, C, H, W = x_nchw.shape
    HW = H * W

    # Images per grid step, stacked along the lane axis.
    nb = max(1, min(N, max(1, max_lanes // HW)))
    if N % nb != 0:
        nb = 1
    grid = (N // nb,)

    # Channels-major slab: channels on sublanes, (image, pixel) on lanes.
    x_cm = (jnp.transpose(x_nchw, (1, 0, 2, 3))
            .reshape(C, N * HW).astype(jnp.bfloat16))

    s1, b1 = fold_bn(*params["bn1"])
    s2, b2 = fold_bn(*params["bn2"])

    def fold_w(w9, scale):
        # w9: (9, Cin, Cout), tap index k = 3*dh + dw.
        # -> (Cout, 9*Cin) with BN scale folded in, col index = k*Cin + ci.
        cout, cin = w9.shape[2], w9.shape[1]
        return (jnp.transpose(w9, (2, 0, 1)) * scale[:, None, None]
                ).reshape(cout, 9 * cin).astype(jnp.bfloat16)

    w1t = fold_w(params["w1"], s1)
    w2t = fold_w(params["w2"], s2)
    b1c = b1.reshape(C, 1).astype(jnp.float32)
    b2c = b2.reshape(C, 1).astype(jnp.float32)

    kernel = functools.partial(basic_block_kernel, H=H, W=W)
    out = pl.pallas_call(
        kernel,
        out_shape=jax.ShapeDtypeStruct((C, N * HW), jnp.float32),
        grid=grid,
        in_specs=[
            pl.BlockSpec((C, nb * HW), lambda n: (0, n)),
            pl.BlockSpec((C, 9 * C), lambda n: (0, 0)),
            pl.BlockSpec((C, 1), lambda n: (0, 0)),
            pl.BlockSpec((C, 9 * C), lambda n: (0, 0)),
            pl.BlockSpec((C, 1), lambda n: (0, 0)),
        ],
        out_specs=pl.BlockSpec((C, nb * HW), lambda n: (0, n)),
        compiler_params=pltpu.CompilerParams(
            dimension_semantics=("parallel",)),
    )(x_cm, w1t, b1c, w2t, b2c)
    return jnp.transpose(out.reshape(C, N, H, W), (1, 0, 2, 3))


def reference_forward(x_nchw, params):
    """Plain-JAX reference with identical numerics (bf16 inputs/weights,
    folded BN, f32 accumulation) used only for the correctness check."""
    N, C, H, W = x_nchw.shape
    s1, b1 = fold_bn(*params["bn1"])
    s2, b2 = fold_bn(*params["bn2"])
    x = x_nchw.astype(jnp.bfloat16)
    w1 = (params["w1"] * s1.reshape(1, 1, -1)).reshape(3, 3, C, C).astype(jnp.bfloat16)
    w2 = (params["w2"] * s2.reshape(1, 1, -1)).reshape(3, 3, C, C).astype(jnp.bfloat16)

    def conv(inp, w):
        return jax.lax.conv_general_dilated(
            inp, w, window_strides=(1, 1), padding="SAME",
            dimension_numbers=("NCHW", "HWIO", "NCHW"),
            preferred_element_type=jnp.float32)

    b1c = b1.reshape(1, C, 1, 1)
    b2c = b2.reshape(1, C, 1, 1)
    y = jnp.maximum(conv(x, w1) + b1c, 0.0)
    y = jnp.maximum(conv(y.astype(jnp.bfloat16), w2) + b2c
                    + x.astype(jnp.float32), 0.0)
    return y


if __name__ == "__main__":
    # BasicBlock(inplanes=8, planes=8, stride=1, downsample=None)
    N, C, H, W = 2, 8, 16, 16
    key = jax.random.PRNGKey(0)
    ks = jax.random.split(key, 11)

    x = jax.random.normal(ks[0], (N, C, H, W), jnp.float32)

    # conv weights stored as (9, Cin, Cout), tap index 3*dh + dw
    # (== torch (Cout, Cin, 3, 3) permuted).
    w1 = jax.random.normal(ks[1], (9, C, C), jnp.float32) * 0.1
    w2 = jax.random.normal(ks[2], (9, C, C), jnp.float32) * 0.1

    params = {
        "w1": w1,
        "w2": w2,
        # (gamma, beta, running_mean, running_var) for each BatchNorm2d(planes)
        "bn1": (1.0 + 0.1 * jax.random.normal(ks[3], (C,), jnp.float32),
                0.1 * jax.random.normal(ks[4], (C,), jnp.float32),
                0.1 * jax.random.normal(ks[5], (C,), jnp.float32),
                0.5 + jnp.abs(jax.random.normal(ks[6], (C,), jnp.float32))),
        "bn2": (1.0 + 0.1 * jax.random.normal(ks[7], (C,), jnp.float32),
                0.1 * jax.random.normal(ks[8], (C,), jnp.float32),
                0.1 * jax.random.normal(ks[9], (C,), jnp.float32),
                0.5 + jnp.abs(jax.random.normal(ks[10], (C,), jnp.float32))),
    }

    out = jax.block_until_ready(basic_block_forward(x, params))
    ref = jax.block_until_ready(reference_forward(x, params))

    assert out.shape == (N, C, H, W)
    assert out.dtype == jnp.float32
    max_err = jnp.max(jnp.abs(out - ref))
    assert jnp.allclose(out, ref, atol=1e-2, rtol=1e-2), (
        f"mismatch vs reference (max abs err {max_err})")
    print("KERNEL_OK")
</pallas_src>

<mosaic_0001>
module attributes {stable_mosaic.version = 11 : i64} {
  func.func @basic_block_kernel(%arg0: i32, %arg1: memref<8x512xbf16, #tpu.memory_space<vmem>>, %arg2: memref<8x72xbf16, #tpu.memory_space<vmem>>, %arg3: memref<8x1xf32, #tpu.memory_space<vmem>>, %arg4: memref<8x72xbf16, #tpu.memory_space<vmem>>, %arg5: memref<8x1xf32, #tpu.memory_space<vmem>>, %arg6: memref<8x512xf32, #tpu.memory_space<vmem>>) attributes {dimension_semantics = [#tpu.dimension_semantics<parallel>], iteration_bounds = array<i64: 1>, scalar_prefetch = 0 : i64, scratch_operands = 0 : i64, tpu.core_type = #tpu.core_type<tc>, window_params = [{transform_indices = @transform_0, window_bounds = array<i64: 8, 512>}, {pipeline_mode = #tpu.pipeline_mode<synchronous>, transform_indices = @transform_1, window_bounds = array<i64: 8, 72>}, {pipeline_mode = #tpu.pipeline_mode<synchronous>, transform_indices = @transform_2, window_bounds = array<i64: 8, 1>}, {pipeline_mode = #tpu.pipeline_mode<synchronous>, transform_indices = @transform_3, window_bounds = array<i64: 8, 72>}, {pipeline_mode = #tpu.pipeline_mode<synchronous>, transform_indices = @transform_4, window_bounds = array<i64: 8, 1>}, {transform_indices = @transform_5, window_bounds = array<i64: 8, 512>}]} {
    %c0 = arith.constant 0 : index
    %c0_0 = arith.constant 0 : index
    %0 = vector.load %arg1[%c0, %c0_0] : memref<8x512xbf16, #tpu.memory_space<vmem>>, vector<8x512xbf16>
    %1 = arith.extf %0 : vector<8x512xbf16> to vector<8x512xf32>
    %2 = tpu.iota {dimensions = array<i32: 1>} : vector<1x512xi32>
    %c255_i32 = arith.constant 255 : i32
    %3 = vector.broadcast %c255_i32 : i32 to vector<1x512xi32>
    %4 = arith.andi %2, %3 : vector<1x512xi32>
    %c15_i32 = arith.constant 15 : i32
    %5 = vector.broadcast %c15_i32 : i32 to vector<1x512xi32>
    %6 = arith.andi %4, %5 : vector<1x512xi32>
    %c16_i32 = arith.constant 16 : i32
    %7 = vector.broadcast %c16_i32 : i32 to vector<1x512xi32>
    %8 = arith.cmpi sge, %4, %7 : vector<1x512xi32>
    %c1_i32 = arith.constant 1 : i32
    %9 = vector.broadcast %c1_i32 : i32 to vector<1x512xi32>
    %10 = arith.cmpi sge, %6, %9 : vector<1x512xi32>
    %11 = arith.andi %8, %10 : vector<1x512xi1>
    %c16_i32_1 = arith.constant 16 : i32
    %12 = vector.broadcast %c16_i32_1 : i32 to vector<1x512xi32>
    %13 = arith.cmpi sge, %4, %12 : vector<1x512xi32>
    %c16_i32_2 = arith.constant 16 : i32
    %14 = vector.broadcast %c16_i32_2 : i32 to vector<1x512xi32>
    %15 = arith.cmpi sge, %4, %14 : vector<1x512xi32>
    %c14_i32 = arith.constant 14 : i32
    %16 = vector.broadcast %c14_i32 : i32 to vector<1x512xi32>
    %17 = arith.cmpi sle, %6, %16 : vector<1x512xi32>
    %18 = arith.andi %15, %17 : vector<1x512xi1>
    %c1_i32_3 = arith.constant 1 : i32
    %19 = vector.broadcast %c1_i32_3 : i32 to vector<1x512xi32>
    %20 = arith.cmpi sge, %6, %19 : vector<1x512xi32>
    %c14_i32_4 = arith.constant 14 : i32
    %21 = vector.broadcast %c14_i32_4 : i32 to vector<1x512xi32>
    %22 = arith.cmpi sle, %6, %21 : vector<1x512xi32>
    %c240_i32 = arith.constant 240 : i32
    %23 = vector.broadcast %c240_i32 : i32 to vector<1x512xi32>
    %24 = arith.cmpi slt, %4, %23 : vector<1x512xi32>
    %c1_i32_5 = arith.constant 1 : i32
    %25 = vector.broadcast %c1_i32_5 : i32 to vector<1x512xi32>
    %26 = arith.cmpi sge, %6, %25 : vector<1x512xi32>
    %27 = arith.andi %24, %26 : vector<1x512xi1>
    %c240_i32_6 = arith.constant 240 : i32
    %28 = vector.broadcast %c240_i32_6 : i32 to vector<1x512xi32>
    %29 = arith.cmpi slt, %4, %28 : vector<1x512xi32>
    %c240_i32_7 = arith.constant 240 : i32
    %30 = vector.broadcast %c240_i32_7 : i32 to vector<1x512xi32>
    %31 = arith.cmpi slt, %4, %30 : vector<1x512xi32>
    %c14_i32_8 = arith.constant 14 : i32
    %32 = vector.broadcast %c14_i32_8 : i32 to vector<1x512xi32>
    %33 = arith.cmpi sle, %6, %32 : vector<1x512xi32>
    %34 = arith.andi %31, %33 : vector<1x512xi1>
    %cst = arith.constant 0.000000e+00 : bf16
    %35 = vector.broadcast %cst : bf16 to vector<8x17xbf16>
    %36 = vector.extract_strided_slice %0 {offsets = [0, 0], sizes = [8, 495], strides = [1, 1]} : vector<8x512xbf16> to vector<8x495xbf16>
    %37 = tpu.concatenate %35, %36 in 1 : vector<8x17xbf16>, vector<8x495xbf16> -> vector<8x512xbf16>
    %cst_9 = arith.constant 0.000000e+00 : bf16
    %38 = vector.shape_cast %11 : vector<1x512xi1> to vector<1x512xi1>
    %39 = vector.broadcast %38 : vector<1x512xi1> to vector<8x512xi1>
    %40 = vector.broadcast %cst_9 : bf16 to vector<8x512xbf16>
    %41 = arith.select %39, %37, %40 : vector<8x512xi1>, vector<8x512xbf16>
    %cst_10 = arith.constant 0.000000e+00 : bf16
    %42 = vector.broadcast %cst_10 : bf16 to vector<8x16xbf16>
    %43 = vector.extract_strided_slice %0 {offsets = [0, 0], sizes = [8, 496], strides = [1, 1]} : vector<8x512xbf16> to vector<8x496xbf16>
    %44 = tpu.concatenate %42, %43 in 1 : vector<8x16xbf16>, vector<8x496xbf16> -> vector<8x512xbf16>
    %cst_11 = arith.constant 0.000000e+00 : bf16
    %45 = vector.shape_cast %13 : vector<1x512xi1> to vector<1x512xi1>
    %46 = vector.broadcast %45 : vector<1x512xi1> to vector<8x512xi1>
    %47 = vector.broadcast %cst_11 : bf16 to vector<8x512xbf16>
    %48 = arith.select %46, %44, %47 : vector<8x512xi1>, vector<8x512xbf16>
    %cst_12 = arith.constant 0.000000e+00 : bf16
    %49 = vector.broadcast %cst_12 : bf16 to vector<8x15xbf16>
    %50 = vector.extract_strided_slice %0 {offsets = [0, 0], sizes = [8, 497], strides = [1, 1]} : vector<8x512xbf16> to vector<8x497xbf16>
    %51 = tpu.concatenate %49, %50 in 1 : vector<8x15xbf16>, vector<8x497xbf16> -> vector<8x512xbf16>
    %cst_13 = arith.constant 0.000000e+00 : bf16
    %52 = vector.shape_cast %18 : vector<1x512xi1> to vector<1x512xi1>
    %53 = vector.broadcast %52 : vector<1x512xi1> to vector<8x512xi1>
    %54 = vector.broadcast %cst_13 : bf16 to vector<8x512xbf16>
    %55 = arith.select %53, %51, %54 : vector<8x512xi1>, vector<8x512xbf16>
    %cst_14 = arith.constant 0.000000e+00 : bf16
    %56 = vector.broadcast %cst_14 : bf16 to vector<8x1xbf16>
    %57 = vector.extract_strided_slice %0 {offsets = [0, 0], sizes = [8, 511], strides = [1, 1]} : vector<8x512xbf16> to vector<8x511xbf16>
    %58 = tpu.concatenate %56, %57 in 1 : vector<8x1xbf16>, vector<8x511xbf16> -> vector<8x512xbf16>
    %cst_15 = arith.constant 0.000000e+00 : bf16
    %59 = vector.shape_cast %20 : vector<1x512xi1> to vector<1x512xi1>
    %60 = vector.broadcast %59 : vector<1x512xi1> to vector<8x512xi1>
    %61 = vector.broadcast %cst_15 : bf16 to vector<8x512xbf16>
    %62 = arith.select %60, %58, %61 : vector<8x512xi1>, vector<8x512xbf16>
    %cst_16 = arith.constant 0.000000e+00 : bf16
    %63 = vector.broadcast %cst_16 : bf16 to vector<8x1xbf16>
    %64 = vector.extract_strided_slice %0 {offsets = [0, 1], sizes = [8, 511], strides = [1, 1]} : vector<8x512xbf16> to vector<8x511xbf16>
    %65 = tpu.concatenate %64, %63 in 1 : vector<8x511xbf16>, vector<8x1xbf16> -> vector<8x512xbf16>
    %cst_17 = arith.constant 0.000000e+00 : bf16
    %66 = vector.shape_cast %22 : vector<1x512xi1> to vector<1x512xi1>
    %67 = vector.broadcast %66 : vector<1x512xi1> to vector<8x512xi1>
    %68 = vector.broadcast %cst_17 : bf16 to vector<8x512xbf16>
    %69 = arith.select %67, %65, %68 : vector<8x512xi1>, vector<8x512xbf16>
    %cst_18 = arith.constant 0.000000e+00 : bf16
    %70 = vector.broadcast %cst_18 : bf16 to vector<8x15xbf16>
    %71 = vector.extract_strided_slice %0 {offsets = [0, 15], sizes = [8, 497], strides = [1, 1]} : vector<8x512xbf16> to vector<8x497xbf16>
    %72 = tpu.concatenate %71, %70 in 1 : vector<8x497xbf16>, vector<8x15xbf16> -> vector<8x512xbf16>
    %cst_19 = arith.constant 0.000000e+00 : bf16
    %73 = vector.shape_cast %27 : vector<1x512xi1> to vector<1x512xi1>
    %74 = vector.broadcast %73 : vector<1x512xi1> to vector<8x512xi1>
    %75 = vector.broadcast %cst_19 : bf16 to vector<8x512xbf16>
    %76 = arith.select %74, %72, %75 : vector<8x512xi1>, vector<8x512xbf16>
    %cst_20 = arith.constant 0.000000e+00 : bf16
    %77 = vector.broadcast %cst_20 : bf16 to vector<8x16xbf16>
    %78 = vector.extract_strided_slice %0 {offsets = [0, 16], sizes = [8, 496], strides = [1, 1]} : vector<8x512xbf16> to vector<8x496xbf16>
    %79 = tpu.concatenate %78, %77 in 1 : vector<8x496xbf16>, vector<8x16xbf16> -> vector<8x512xbf16>
    %cst_21 = arith.constant 0.000000e+00 : bf16
    %80 = vector.shape_cast %29 : vector<1x512xi1> to vector<1x512xi1>
    %81 = vector.broadcast %80 : vector<1x512xi1> to vector<8x512xi1>
    %82 = vector.broadcast %cst_21 : bf16 to vector<8x512xbf16>
    %83 = arith.select %81, %79, %82 : vector<8x512xi1>, vector<8x512xbf16>
    %cst_22 = arith.constant 0.000000e+00 : bf16
    %84 = vector.broadcast %cst_22 : bf16 to vector<8x17xbf16>
    %85 = vector.extract_strided_slice %0 {offsets = [0, 17], sizes = [8, 495], strides = [1, 1]} : vector<8x512xbf16> to vector<8x495xbf16>
    %86 = tpu.concatenate %85, %84 in 1 : vector<8x495xbf16>, vector<8x17xbf16> -> vector<8x512xbf16>
    %cst_23 = arith.constant 0.000000e+00 : bf16
    %87 = vector.shape_cast %34 : vector<1x512xi1> to vector<1x512xi1>
    %88 = vector.broadcast %87 : vector<1x512xi1> to vector<8x512xi1>
    %89 = vector.broadcast %cst_23 : bf16 to vector<8x512xbf16>
    %90 = arith.select %88, %86, %89 : vector<8x512xi1>, vector<8x512xbf16>
    %91 = tpu.concatenate %41, %48, %55, %62, %0, %69, %76, %83, %90 in 0 : vector<8x512xbf16>, vector<8x512xbf16>, vector<8x512xbf16>, vector<8x512xbf16>, vector<8x512xbf16>, vector<8x512xbf16>, vector<8x512xbf16>, vector<8x512xbf16>, vector<8x512xbf16> -> vector<72x512xbf16>
    %c0_24 = arith.constant 0 : index
    %c0_25 = arith.constant 0 : index
    %92 = vector.load %arg2[%c0_24, %c0_25] : memref<8x72xbf16, #tpu.memory_space<vmem>>, vector<8x72xbf16>
    %cst_26 = arith.constant dense<0.000000e+00> : vector<8x512xf32>
    %93 = tpu.matmul %92, %91, %cst_26 {dimension_numbers = #tpu.dot_dimension_numbers<[1], [0], [0], [1], [0, 0, 1, 1], [], []>} : vector<8x72xbf16>, vector<72x512xbf16>, vector<8x512xf32> -> vector<8x512xf32>
    %c0_27 = arith.constant 0 : index
    %c0_28 = arith.constant 0 : index
    %94 = vector.load %arg3[%c0_27, %c0_28] : memref<8x1xf32, #tpu.memory_space<vmem>>, vector<8x1xf32>
    %95 = vector.broadcast %94 : vector<8x1xf32> to vector<8x512xf32>
    %96 = arith.addf %93, %95 : vector<8x512xf32>
    %cst_29 = arith.constant 0.000000e+00 : f32
    %97 = vector.broadcast %cst_29 : f32 to vector<8x512xf32>
    %98 = arith.maximumf %96, %97 : vector<8x512xf32>
    %99 = arith.truncf %98 : vector<8x512xf32> to vector<8x512xbf16>
    %cst_30 = arith.constant 0.000000e+00 : bf16
    %100 = vector.broadcast %cst_30 : bf16 to vector<8x17xbf16>
    %101 = vector.extract_strided_slice %99 {offsets = [0, 0], sizes = [8, 495], strides = [1, 1]} : vector<8x512xbf16> to vector<8x495xbf16>
    %102 = tpu.concatenate %100, %101 in 1 : vector<8x17xbf16>, vector<8x495xbf16> -> vector<8x512xbf16>
    %cst_31 = arith.constant 0.000000e+00 : bf16
    %103 = vector.shape_cast %11 : vector<1x512xi1> to vector<1x512xi1>
    %104 = vector.broadcast %103 : vector<1x512xi1> to vector<8x512xi1>
    %105 = vector.broadcast %cst_31 : bf16 to vector<8x512xbf16>
    %106 = arith.select %104, %102, %105 : vector<8x512xi1>, vector<8x512xbf16>
    %cst_32 = arith.constant 0.000000e+00 : bf16
    %107 = vector.broadcast %cst_32 : bf16 to vector<8x16xbf16>
    %108 = vector.extract_strided_slice %99 {offsets = [0, 0], sizes = [8, 496], strides = [1, 1]} : vector<8x512xbf16> to vector<8x496xbf16>
    %109 = tpu.concatenate %107, %108 in 1 : vector<8x16xbf16>, vector<8x496xbf16> -> vector<8x512xbf16>
    %cst_33 = arith.constant 0.000000e+00 : bf16
    %110 = vector.shape_cast %13 : vector<1x512xi1> to vector<1x512xi1>
    %111 = vector.broadcast %110 : vector<1x512xi1> to vector<8x512xi1>
    %112 = vector.broadcast %cst_33 : bf16 to vector<8x512xbf16>
    %113 = arith.select %111, %109, %112 : vector<8x512xi1>, vector<8x512xbf16>
    %cst_34 = arith.constant 0.000000e+00 : bf16
    %114 = vector.broadcast %cst_34 : bf16 to vector<8x15xbf16>
    %115 = vector.extract_strided_slice %99 {offsets = [0, 0], sizes = [8, 497], strides = [1, 1]} : vector<8x512xbf16> to vector<8x497xbf16>
    %116 = tpu.concatenate %114, %115 in 1 : vector<8x15xbf16>, vector<8x497xbf16> -> vector<8x512xbf16>
    %cst_35 = arith.constant 0.000000e+00 : bf16
    %117 = vector.shape_cast %18 : vector<1x512xi1> to vector<1x512xi1>
    %118 = vector.broadcast %117 : vector<1x512xi1> to vector<8x512xi1>
    %119 = vector.broadcast %cst_35 : bf16 to vector<8x512xbf16>
    %120 = arith.select %118, %116, %119 : vector<8x512xi1>, vector<8x512xbf16>
    %cst_36 = arith.constant 0.000000e+00 : bf16
    %121 = vector.broadcast %cst_36 : bf16 to vector<8x1xbf16>
    %122 = vector.extract_strided_slice %99 {offsets = [0, 0], sizes = [8, 511], strides = [1, 1]} : vector<8x512xbf16> to vector<8x511xbf16>
    %123 = tpu.concatenate %121, %122 in 1 : vector<8x1xbf16>, vector<8x511xbf16> -> vector<8x512xbf16>
    %cst_37 = arith.constant 0.000000e+00 : bf16
    %124 = vector.shape_cast %20 : vector<1x512xi1> to vector<1x512xi1>
    %125 = vector.broadcast %124 : vector<1x512xi1> to vector<8x512xi1>
    %126 = vector.broadcast %cst_37 : bf16 to vector<8x512xbf16>
    %127 = arith.select %125, %123, %126 : vector<8x512xi1>, vector<8x512xbf16>
    %cst_38 = arith.constant 0.000000e+00 : bf16
    %128 = vector.broadcast %cst_38 : bf16 to vector<8x1xbf16>
    %129 = vector.extract_strided_slice %99 {offsets = [0, 1], sizes = [8, 511], strides = [1, 1]} : vector<8x512xbf16> to vector<8x511xbf16>
    %130 = tpu.concatenate %129, %128 in 1 : vector<8x511xbf16>, vector<8x1xbf16> -> vector<8x512xbf16>
    %cst_39 = arith.constant 0.000000e+00 : bf16
    %131 = vector.shape_cast %22 : vector<1x512xi1> to vector<1x512xi1>
    %132 = vector.broadcast %131 : vector<1x512xi1> to vector<8x512xi1>
    %133 = vector.broadcast %cst_39 : bf16 to vector<8x512xbf16>
    %134 = arith.select %132, %130, %133 : vector<8x512xi1>, vector<8x512xbf16>
    %cst_40 = arith.constant 0.000000e+00 : bf16
    %135 = vector.broadcast %cst_40 : bf16 to vector<8x15xbf16>
    %136 = vector.extract_strided_slice %99 {offsets = [0, 15], sizes = [8, 497], strides = [1, 1]} : vector<8x512xbf16> to vector<8x497xbf16>
    %137 = tpu.concatenate %136, %135 in 1 : vector<8x497xbf16>, vector<8x15xbf16> -> vector<8x512xbf16>
    %cst_41 = arith.constant 0.000000e+00 : bf16
    %138 = vector.shape_cast %27 : vector<1x512xi1> to vector<1x512xi1>
    %139 = vector.broadcast %138 : vector<1x512xi1> to vector<8x512xi1>
    %140 = vector.broadcast %cst_41 : bf16 to vector<8x512xbf16>
    %141 = arith.select %139, %137, %140 : vector<8x512xi1>, vector<8x512xbf16>
    %cst_42 = arith.constant 0.000000e+00 : bf16
    %142 = vector.broadcast %cst_42 : bf16 to vector<8x16xbf16>
    %143 = vector.extract_strided_slice %99 {offsets = [0, 16], sizes = [8, 496], strides = [1, 1]} : vector<8x512xbf16> to vector<8x496xbf16>
    %144 = tpu.concatenate %143, %142 in 1 : vector<8x496xbf16>, vector<8x16xbf16> -> vector<8x512xbf16>
    %cst_43 = arith.constant 0.000000e+00 : bf16
    %145 = vector.shape_cast %29 : vector<1x512xi1> to vector<1x512xi1>
    %146 = vector.broadcast %145 : vector<1x512xi1> to vector<8x512xi1>
    %147 = vector.broadcast %cst_43 : bf16 to vector<8x512xbf16>
    %148 = arith.select %146, %144, %147 : vector<8x512xi1>, vector<8x512xbf16>
    %cst_44 = arith.constant 0.000000e+00 : bf16
    %149 = vector.broadcast %cst_44 : bf16 to vector<8x17xbf16>
    %150 = vector.extract_strided_slice %99 {offsets = [0, 17], sizes = [8, 495], strides = [1, 1]} : vector<8x512xbf16> to vector<8x495xbf16>
    %151 = tpu.concatenate %150, %149 in 1 : vector<8x495xbf16>, vector<8x17xbf16> -> vector<8x512xbf16>
    %cst_45 = arith.constant 0.000000e+00 : bf16
    %152 = vector.shape_cast %34 : vector<1x512xi1> to vector<1x512xi1>
    %153 = vector.broadcast %152 : vector<1x512xi1> to vector<8x512xi1>
    %154 = vector.broadcast %cst_45 : bf16 to vector<8x512xbf16>
    %155 = arith.select %153, %151, %154 : vector<8x512xi1>, vector<8x512xbf16>
    %156 = tpu.concatenate %106, %113, %120, %127, %99, %134, %141, %148, %155 in 0 : vector<8x512xbf16>, vector<8x512xbf16>, vector<8x512xbf16>, vector<8x512xbf16>, vector<8x512xbf16>, vector<8x512xbf16>, vector<8x512xbf16>, vector<8x512xbf16>, vector<8x512xbf16> -> vector<72x512xbf16>
    %c0_46 = arith.constant 0 : index
    %c0_47 = arith.constant 0 : index
    %157 = vector.load %arg4[%c0_46, %c0_47] : memref<8x72xbf16, #tpu.memory_space<vmem>>, vector<8x72xbf16>
    %cst_48 = arith.constant dense<0.000000e+00> : vector<8x512xf32>
    %158 = tpu.matmul %157, %156, %cst_48 {dimension_numbers = #tpu.dot_dimension_numbers<[1], [0], [0], [1], [0, 0, 1, 1], [], []>} : vector<8x72xbf16>, vector<72x512xbf16>, vector<8x512xf32> -> vector<8x512xf32>
    %c0_49 = arith.constant 0 : index
    %c0_50 = arith.constant 0 : index
    %159 = vector.load %arg5[%c0_49, %c0_50] : memref<8x1xf32, #tpu.memory_space<vmem>>, vector<8x1xf32>
    %160 = vector.broadcast %159 : vector<8x1xf32> to vector<8x512xf32>
    %161 = arith.addf %158, %160 : vector<8x512xf32>
    %162 = arith.addf %161, %1 : vector<8x512xf32>
    %cst_51 = arith.constant 0.000000e+00 : f32
    %163 = vector.broadcast %cst_51 : f32 to vector<8x512xf32>
    %164 = arith.maximumf %162, %163 : vector<8x512xf32>
    %c0_52 = arith.constant 0 : index
    %c0_53 = arith.constant 0 : index
    %165 = vector.load %arg6[%c0_52, %c0_53] : memref<8x512xf32, #tpu.memory_space<vmem>>, vector<8x512xf32>
    tpu.vector_store %arg6[%c0_52, %c0_53], %164 {strides = array<i32>} : memref<8x512xf32, #tpu.memory_space<vmem>>, vector<8x512xf32>,
    return
  }
  func.func @transform_0(%arg0: i32) -> (i32, i32) {
    %c0_i32 = arith.constant 0 : i32
    %c0_i32_0 = arith.constant 0 : i32
    return %c0_i32, %arg0 : i32, i32
  }
  func.func @transform_1(%arg0: i32) -> (i32, i32) {
    %c0_i32 = arith.constant 0 : i32
    %c0_i32_0 = arith.constant 0 : i32
    %c0_i32_1 = arith.constant 0 : i32
    return %c0_i32, %c0_i32_0 : i32, i32
  }
  func.func @transform_2(%arg0: i32) -> (i32, i32) {
    %c0_i32 = arith.constant 0 : i32
    %c0_i32_0 = arith.constant 0 : i32
    %c0_i32_1 = arith.constant 0 : i32
    return %c0_i32, %c0_i32_0 : i32, i32
  }
  func.func @transform_3(%arg0: i32) -> (i32, i32) {
    %c0_i32 = arith.constant 0 : i32
    %c0_i32_0 = arith.constant 0 : i32
    %c0_i32_1 = arith.constant 0 : i32
    return %c0_i32, %c0_i32_0 : i32, i32
  }
  func.func @transform_4(%arg0: i32) -> (i32, i32) {
    %c0_i32 = arith.constant 0 : i32
    %c0_i32_0 = arith.constant 0 : i32
    %c0_i32_1 = arith.constant 0 : i32
    return %c0_i32, %c0_i32_0 : i32, i32
  }
  func.func @transform_5(%arg0: i32) -> (i32, i32) {
    %c0_i32 = arith.constant 0 : i32
    %c0_i32_0 = arith.constant 0 : i32
    return %c0_i32, %arg0 : i32, i32
  }
}

</mosaic_0001>

<bundles_post_ra>
// kernel: tpu_custom_call.1
= control target key start
LH: loop header
LB: loop body
LE: loop exit
PB: predicated region body
PF: predicated region fallthrough
CT: control target
= control target key end

     0   :  { %10 = vsyncpa [#allocation3], 0  ;;  %s2284_s0 = inlined_call_operand.vmem [shape: bf16[8,512], index: 0, kind: input, shape index: {}]   ;;  %s2285_s1 = inlined_call_operand.hbm [shape: bf16[8,72], index: 1, kind: input, shape index: {}]   ;;  %s2286_s2 = inlined_call_operand.vmem [shape: f32[8,1], index: 2, kind: input, shape index: {}]   ;;  %s2287_s3 = inlined_call_operand.hbm [shape: bf16[8,72], index: 3, kind: input, shape index: {}]   ;;  %s2288_s4 = inlined_call_operand.vmem [shape: f32[8,1], index: 4, kind: input, shape index: {}]   ;;  %s2289_s5 = inlined_call_operand.hbm [shape: f32[8,512], index: 5, kind: output, shape index: {}]  }
   0x1   :  { %11 = vsyncpa [#allocation6], 0 }
   0x2   :  { %12 = vsyncpa [#allocation4], 0  ;;  %s20_s20 = sshll.u32 %s2285_s1, 4  ;;  %s1309_s21 = smov [#allocation2]   ;;  %s21_s20 = int_to_ptr.hbm [resolvable:$true] %s20_s20 }
   0x3   :  { %s22_s22 = sshll.u32 %s1309_s21, 4  ;;  %s33_s25 = sshll.u32 %s2287_s3, 4  ;;  %s23_s22 = int_to_ptr.vmem [resolvable:$true] %s22_s22  ;;  %s34_s25 = int_to_ptr.hbm [resolvable:$true] %s33_s25 }
   0x4   :  { %25 = dma.hbm_to_vmem [thread:$0]  %s21_s20, 64, %s23_s22, [#allocation3]  }
   0x5   :  { %s1310_s26 = smov [#allocation5]  }
   0x6   :  { %s35_s27 = sshll.u32 %s1310_s26, 4  ;;  %s36_s27 = int_to_ptr.vmem [resolvable:$true] %s35_s27 }
   0x7   :  { %38 = dma.hbm_to_vmem [thread:$0]  %s34_s25, 64, %s36_s27, [#allocation6]  }
   0x8   :  { %1303 = dma.done.wait [#allocation3], 64  }
   0x9   :  { %1304 = vsyncadd [#allocation3], 4294967232 }
   0xa   :  { %1305 = dma.done.wait [#allocation6], 64  }
   0xb   :  { %1306 = vsyncadd [#allocation6], 4294967232  ;;  %v53_v0 = vld [vmem:[%s2284_s0 + $0x8] sm:$0xff]  ;;  %s1311_s29 = smov 113   ;;  %s1312_s3 = smov 112   ;;  %v52_v5 = vld [vmem:[%s2284_s0] sm:$0xff]  ;;  %v58_v10 = vlaneseq }
   0xc   :  { %v107_v1 = vunpack.c.l.b16 %v53_v0  ;;  %v108_v3 = vunpack.c.h.b16 %v53_v0  ;;  %s1313_s30 = smov 111   ;;  %v106_v6 = vunpack.c.h.b16 %v52_v5  ;;  %s1314_s8 = smov 127   ;;  %v105_v8 = vunpack.c.l.b16 %v52_v5 }
   0xd   :  { %s1315_s9 = smov 1   ;;  %s1316_s10 = smov 15   ;;  %v1436_v11 = vand.u32 127, %v58_v10  ;;  %v1319_v12 = vmov 0   ;;  %vm2290_vm3 = vmmov 1   ;;  %v2333_v50 = vmov 0 }
   0xe   :  { %v1361_v2 = vpack.c.b16 %v107_v1, %v107_v1  ;;  %v1369_v4 = vpack.c.b16 %v108_v3, %v108_v3  ;;  %v1380_v7 = vpack.c.b16 %v106_v6, %v106_v6  ;;  %v1394_v9 = vpack.c.b16 %v105_v8, %v105_v8  ;;  %s1317_s11 = smov 16   ;;  %s1318_s12 = smov 17   ;;  %1227 = vset.pattern.permute.xlu2 %v1319_v12 }
   0xf   :  { %1228 = vset.pattern.permute.xlu0 %v1319_v12  ;;  %v62_v13 = vadd.s32 384, %v1436_v11  ;;  %v1442_v14 = vadd.s32 256, %v1436_v11  ;;  %v1474_v31 = vunpack.c.l.b16 %v1319_v12  ;;  %v1477_v35 = vunpack.c.h.b16 %v1319_v12  ;;  %s1321_s19 = smov [#allocation7]   ;;  %s1195_s23 = sshll.u32 %s2289_s5, 4  ;;  %s1196_s23 = int_to_ptr.hbm [resolvable:$true] %s1195_s23 }
  0x10   :  { %453 = vrot.lane.b32.xlu2 %v1361_v2, %s1311_s29  ;;  %520 = vrot.lane.b32.xlu1 %v1361_v2, %s1312_s3  ;;  %v1499_v52 = vadd.s32 128, %v1436_v11  ;;  %v2335_v53 = vmov 0  ;;  %v2337_v56 = vmov 0  ;;  %v2341_v58 = vmov 0  ;;  %s1193_s20 = sshll.u32 %s1321_s19, 4  ;;  %s1194_s20 = int_to_ptr.vmem [resolvable:$true] %s1193_s20 }
  0x11   :  { %587 = vrot.lane.b32.xlu0 %v1361_v2, %s1313_s30  ;;  %v66_v15 = vand.u32 255, %v62_v13  ;;  %v65_v17 = vand.u32 255, %v1442_v14  ;;  %v2343_v62 = vmov 0 }
  0x12   :  { %v64_v0 = vand.u32 255, %v1499_v52 }
  0x13   :  { %v1447_v18 = vand.u32 15, %v66_v15  ;;  %v1451_v19 = vand.u32 15, %v65_v17  ;;  %vm94_vm1 = vcmp.lt.s32.totalorder %v66_v15, 240 }
  0x14   :  { %vm544_vm4 = vmpackc.low %vm94_vm1, %vm2290_vm3 }
  0x15   :  { %vm2292_vm0 = vcmp.le.s32.totalorder %v1447_v18, 14  ;;  %vm2293_vm2 = vcmp.ge.s32.totalorder %v1447_v18, 1  ;;  %vm2295_vm5 = vcmp.le.s32.totalorder %v1451_v19, 14  ;;  %vm2294_vm7 = vcmp.ge.s32.totalorder %v1451_v19, 1 }
  0x16   :  { %vm102_vm6 = vmand %vm94_vm1, %vm2292_vm0  ;;  %v546_v21 = vsel %vm544_vm4, 65537, %v1319_v12 }
  0x17   :  { %vm98_vm8 = vmand %vm94_vm1, %vm2293_vm2  ;;  %v549_v22 = vperm.slane %v546_v21, 0  ;;  %v550_v24 = vperm.slane %v546_v21, 4 }
  0x18   :  { %455 = vrot.lane.b32.xlu2 %v1369_v4, %s1311_s29  ;;  %522 = vrot.lane.b32.xlu1 %v1369_v4, %s1312_s3  ;;  %vm611_vm9 = vmpackc.low %vm102_vm6, %vm2295_vm5 }
  0x19   :  { %589 = vrot.lane.b32.xlu0 %v1369_v4, %s1313_s30  ;;  %vm477_vm10 = vmpackc.low %vm98_vm8, %vm2294_vm7  ;;  %v613_v23 = vsel %vm611_vm9, 65537, %v1319_v12  ;;  %v565_v28 = vunpack.c.l.b16 %v549_v22  ;;  %v566_v29 = vunpack.c.h.b16 %v549_v22  ;;  %v572_v32 = vunpack.c.l.b16 %v550_v24 }
  0x1a   :  { %v479_v25 = vsel %vm477_vm10, 65537, %v1319_v12  ;;  %v616_v27 = vperm.slane %v613_v23, 0  ;;  %vm410_vm11 = vmpackc.low %vm2292_vm0, %vm2295_vm5  ;;  %v617_v30 = vperm.slane %v613_v23, 4  ;;  %v573_v33 = vunpack.c.h.b16 %v550_v24 }
  0x1b   :  { %v483_v26 = vperm.slane %v479_v25, 4  ;;  %v482_v34 = vperm.slane %v479_v25, 0  ;;  %v412_v36 = vsel %vm410_vm11, 65537, %v1319_v12  ;;  %vm569_vm12 = vcmp.ne.s32.totalorder %v565_v28, %v1474_v31 }
  0x1c   :  { %v632_v41 = vunpack.c.l.b16 %v616_v27  ;;  %v633_v42 = vunpack.c.h.b16 %v616_v27  ;;  %v416_v43 = vperm.slane %v412_v36, 4  ;;  %vm570_vm13 = vcmp.ne.s32.totalorder %v566_v29, %v1477_v35 }
  0x1d   :  { %v505_v37 = vunpack.c.l.b16 %v483_v26  ;;  %v506_v38 = vunpack.c.h.b16 %v483_v26  ;;  %v639_v45 = vunpack.c.l.b16 %v617_v30  ;;  %v640_v46 = vunpack.c.h.b16 %v617_v30  ;;  %vm1492_vm6 = vmpackc.low %vm570_vm13, %vm569_vm12 }
  0x1e   :  { %vm576_vm14 = vcmp.ne.s32.totalorder %v572_v32, %v1474_v31  ;;  %vm577_vm15 = vcmp.ne.s32.totalorder %v573_v33, %v1477_v35  ;;  %v498_v47 = vunpack.c.l.b16 %v482_v34  ;;  %v499_v48 = vunpack.c.h.b16 %v482_v34 }
  0x1f   :  { %vm509_vm1 = vcmp.ne.s32.totalorder %v505_v37, %v1474_v31  ;;  %vm510_vm4 = vcmp.ne.s32.totalorder %v506_v38, %v1477_v35  ;;  %v415_v49 = vperm.slane %v412_v36, 0  ;;  %v2334_v50 = vsel %vm1492_vm6, 4294967295, %v2333_v50  ;;  %vm1501_vm11 = vmpackc.low %vm577_vm15, %vm576_vm14 }
  0x20   :  { %388 = vrot.lane.b32.xlu1 %v1369_v4, %s1314_s8  ;;  %317 = vrot.lane.b32.xlu2 %v1380_v7, %s1315_s9  ;;  %vm636_vm8 = vcmp.ne.s32.totalorder %v632_v41, %v1474_v31  ;;  %vm637_vm9 = vcmp.ne.s32.totalorder %v633_v42, %v1477_v35  ;;  %v438_v51 = vunpack.c.l.b16 %v416_v43  ;;  %vm2296_vm10 = vcmask 924672   ;;  %vm1513_vm2 = vmpackc.low %vm510_vm4, %vm509_vm1 }
  0x21   :  { %386 = vrot.lane.b32.xlu0 %v1361_v2, %s1314_s8  ;;  %v2336_v53 = vsel %vm1501_vm11, 4294967295, %v2335_v53  ;;  %vm643_vm3 = vcmp.ne.s32.totalorder %v639_v45, %v1474_v31  ;;  %vm644_vm12 = vcmp.ne.s32.totalorder %v640_v46, %v1477_v35  ;;  %v439_v54 = vunpack.c.h.b16 %v416_v43  ;;  %vm1525_vm7 = vmpackc.low %vm637_vm9, %vm636_vm8 }
  0x22   :  { %vm2297_vm13 = vcmask 916480   ;;  %v2338_v56 = vsel %vm1513_vm2, 4294967295, %v2337_v56  ;;  %vm1519_vm14 = vcmp.ge.s32.totalorder %v65_v17, 16  ;;  %vm2298_vm15 = vcmask 908288   ;;  %vm1534_vm1 = vmpackc.low %vm644_vm12, %vm643_vm3 }
  0x23   :  { %v2342_v58 = vsel %vm1525_vm7, 4294967295, %v2341_v58  ;;  %vm2304_vm0 = vcmask 1043456   ;;  %vm503_vm5 = vcmp.ne.s32.totalorder %v499_v48, %v1477_v35  ;;  %v431_v59 = vunpack.c.l.b16 %v415_v49 }
  0x24   :  { %v2344_v62 = vsel %vm1534_vm1, 4294967295, %v2343_v62  ;;  %vm442_vm4 = vcmp.ne.s32.totalorder %v438_v51, %v1474_v31  ;;  %v432_v63 = vunpack.c.h.b16 %v415_v49  ;;  %vm2345_vm3 = vcmp.le.s32.totalorder %v1451_v19, 14 }
  0x25   :  { %vm1550_vm9 = vmand %vm1519_vm14, %vm2345_vm3  ;;  %vm2348_vm12 = vcmp.ge.s32.totalorder %v1451_v19, 1  ;;  %vm2349_vm3 = vcmp.ge.s32.totalorder %v1447_v18, 1  ;;  %v2351_v23 = vmov 0  ;;  %v63_v24 = vand.u32 255, %v1436_v11 }
  0x26   :  { %v1586_v28 = vand.u32 15, %v64_v0  ;;  %v2355_v32 = vmov 0  ;;  %v2357_v41 = vmov 0  ;;  %v2422_v49 = vmov 0 }
  0x27   :  { %v1605_v36 = vand.u32 15, %v63_v24 }
  0x28   :  { %321 = vrot.lane.b32.xlu1 %v1369_v4, %s1315_s9  ;;  %250 = vrot.lane.b32.xlu2 %v1380_v7, %s1316_s10 }
  0x29   :  { %319 = vrot.lane.b32.xlu0 %v1361_v2, %s1315_s9 }
  0x30   :  { %254 = vrot.lane.b32.xlu1 %v1369_v4, %s1316_s10  ;;  %583 = vrot.lane.b32.xlu2 %v1394_v9, %s1313_s30 }
  0x31   :  { %252 = vrot.lane.b32.xlu0 %v1361_v2, %s1316_s10 }
  0x38   :  { %183 = vrot.lane.b32.xlu1 %v1380_v7, %s1317_s11  ;;  %185 = vrot.lane.b32.xlu2 %v1361_v2, %s1317_s11 }
  0x39   :  { %585 = vrot.lane.b32.xlu0 %v1380_v7, %s1313_s30 }
  0x40   :  { %516 = vrot.lane.b32.xlu1 %v1394_v9, %s1312_s3  ;;  %518 = vrot.lane.b32.xlu2 %v1380_v7, %s1312_s3 }
  0x41   :  { %187 = vrot.lane.b32.xlu0 %v1369_v4, %s1317_s11 }
  0x48   :  { %117 = vrot.lane.b32.xlu1 %v1361_v2, %s1318_s12  ;;  %119 = vrot.lane.b32.xlu2 %v1369_v4, %s1318_s12 }
  0x49   :  { %115 = vrot.lane.b32.xlu0 %v1380_v7, %s1318_s12 }
  0x50   :  { %451 = vrot.lane.b32.xlu1 %v1380_v7, %s1311_s29  ;;  %382 = vrot.lane.b32.xlu2 %v1394_v9, %s1314_s8 }
  0x51   :  { %449 = vrot.lane.b32.xlu0 %v1394_v9, %s1311_s29 }
  0x58   :  { %315 = vrot.lane.b32.xlu1 %v1394_v9, %s1315_s9  ;;  %248 = vrot.lane.b32.xlu2 %v1394_v9, %s1316_s10 }
  0x59   :  { %384 = vrot.lane.b32.xlu0 %v1380_v7, %s1314_s8 }
  0x60   :  { %113 = vrot.lane.b32.xlu1 %v1394_v9, %s1318_s12 }
  0x61   :  { %181 = vrot.lane.b32.xlu0 %v1394_v9, %s1317_s11 }
  0x6a   :  { %v1444_v16 = vpop.permute.xlu2 %453 }
  0x72   :  { %v456_v20 = vpop.permute.xlu2 %455 }
  0x73   :  { %v466_v55 = vsel %vm2296_vm10, %v456_v20, 0  ;;  %v460_v60 = vsel %vm2296_vm10, %v1444_v16, %v456_v20  ;;  %vm343_vm10 = vmpackc.low %vm2349_vm3, %vm2348_vm12  ;;  %vm2353_vm12 = vcmp.le.s32.totalorder %v1447_v18, 14 }
  0x74   :  { %v515_v6 = vsel %vm1513_vm2, %v466_v55, 0  ;;  %vm276_vm3 = vmpackc.low %vm2353_vm12, %vm1550_vm9  ;;  %v345_v29 = vsel %vm343_vm10, 65537, %v1319_v12  ;;  %vm2354_vm2 = vcmp.ne.s32.totalorder %v439_v54, %v1477_v35  ;;  %vm2305_vm9 = vcmp.le.s32.totalorder %v1605_v36, 14 }
  0x75   :  { %v278_v34 = vsel %vm276_vm3, 65537, %v1319_v12  ;;  %v348_v42 = vperm.slane %v345_v29, 0  ;;  %v349_v46 = vperm.slane %v345_v29, 4  ;;  %v2366_v29 = vmov 0 }
  0x76   :  { %v281_v51 = vperm.slane %v278_v34, 0  ;;  %v282_v55 = vperm.slane %v278_v34, 4  ;;  %v2368_v34 = vmov 0 }
  0x78   :  { %v298_v8 = vunpack.c.h.b16 %v281_v51 }
  0x7a   :  { %v1480_v39 = vpop.permute.xlu2 %317 }
  0x82   :  { %v1482_v40 = vpop.permute.xlu1 %520  ;;  %v1554_v10 = vpop.permute.xlu2 %250 }
  0x83   :  { %v1484_v44 = vpop.permute.xlu0 %587 }
  0x8a   :  { %v523_v61 = vpop.permute.xlu1 %522 }
  0x8b   :  { %v527_v1 = vsel %vm2297_vm13, %v1482_v40, %v523_v61  ;;  %v533_v3 = vsel %vm2297_vm13, %v523_v61, 0  ;;  %v590_v5 = vpop.permute.xlu0 %589  ;;  %vm2350_vm13 = vcmp.ne.s32.totalorder %v498_v47, %v1474_v31  ;;  %v364_v61 = vunpack.c.l.b16 %v348_v42 }
  0x8c   :  { %v581_v13 = vsel %vm1492_vm6, %v527_v1, 0  ;;  %v582_v14 = vsel %vm1501_vm11, %v533_v3, 0  ;;  %v594_v15 = vsel %vm2298_vm15, %v1484_v44, %v590_v5  ;;  %v600_v17 = vsel %vm2298_vm15, %v590_v5, 0  ;;  %vm1575_vm8 = vmpackc.low %vm503_vm5, %vm2350_vm13 }
  0x8d   :  { %v681_v20 = vrot.slane %v582_v14, 4  ;;  %v648_v21 = vsel %vm1525_vm7, %v594_v15, 0  ;;  %v649_v22 = vsel %vm1534_vm1, %v600_v17, 0  ;;  %v2352_v23 = vsel %vm1575_vm8, 4294967295, %v2351_v23  ;;  %vm1596_vm11 = vmpackc.low %vm2354_vm2, %vm442_vm4 }
  0x8e   :  { %v680_v25 = vrot.slane %v581_v13, 4  ;;  %v765_v26 = vsel %vm2304_vm0, %v648_v21, 0  ;;  %v768_v27 = vsel %vm2304_vm0, %v649_v22, 0  ;;  %vm435_vm5 = vcmp.ne.s32.totalorder %v431_v59, %v1474_v31  ;;  %v1631_v59 = vpop.permute.xlu2 %583 }
  0x8f   :  { %799 = vmatpush.bf16.msra.mxu2 %v765_v26  ;;  %812 = vmatpush.bf16.msra.mxu3 %v768_v27  ;;  %vm436_vm13 = vcmp.ne.s32.totalorder %v432_v63, %v1477_v35  ;;  %v745_v30 = vsel %vm2304_vm0, %v515_v6, %v681_v20  ;;  %vm2301_vm15 = vcmask 1039360   ;;  %v2356_v32 = vsel %vm1596_vm11, 4294967295, %v2355_v32 }
  0x90   :  { %v514_v33 = vsel %vm1575_vm8, %v460_v60, 0  ;;  %vm1608_vm10 = vmpackc.low %vm436_vm13, %vm435_vm5  ;;  %vm2302_vm2 = vcmp.le.s32.totalorder %v1586_v28, 14  ;;  %vm1620_vm4 = vcmp.lt.s32.totalorder %v64_v0, 240  ;;  %v365_v63 = vunpack.c.h.b16 %v348_v42 }
  0x91   :  { %v741_v38 = vsel %vm2304_vm0, %v514_v33, %v680_v25  ;;  %v2358_v41 = vsel %vm1608_vm10, 4294967295, %v2357_v41  ;;  %vm100_vm12 = vmand %vm1620_vm4, %vm2302_vm2  ;;  %v371_v1 = vunpack.c.l.b16 %v349_v46  ;;  %v372_v3 = vunpack.c.h.b16 %v349_v46 }
  0x92   :  { %v389_v37 = vpop.permute.xlu1 %388  ;;  %vm610_vm3 = vmpackc.low %vm100_vm12, %vm2305_vm9  ;;  %v297_v6 = vunpack.c.l.b16 %v281_v51  ;;  %v304_v13 = vunpack.c.l.b16 %v282_v55  ;;  %vm368_vm5 = vcmp.ne.s32.totalorder %v364_v61, %v1474_v31  ;;  %vm369_vm13 = vcmp.ne.s32.totalorder %v365_v63, %v1477_v35 }
  0x93   :  { %v399_v43 = vsel %vm2301_vm15, %v389_v37, 0  ;;  %800 = vmatpush.bf16.msra.mxu2 %v741_v38  ;;  %813 = vmatpush.bf16.msra.mxu3 %v745_v30  ;;  %v1614_v45 = vpop.permute.xlu0 %386  ;;  %v305_v15 = vunpack.c.h.b16 %v282_v55  ;;  %vm375_vm2 = vcmp.ne.s32.totalorder %v371_v1, %v1474_v31  ;;  %v2361_v17 = vmov 0 }
  0x94   :  { %v448_v47 = vsel %vm1596_vm11, %v399_v43, 0  ;;  %v393_v48 = vsel %vm2301_vm15, %v1614_v45, %v389_v37  ;;  %vm2309_vm15 = vcmask 7168   ;;  %vm376_vm11 = vcmp.ne.s32.totalorder %v372_v3, %v1477_v35 }
  0x95   :  { %v673_v52 = vrot.slane %v448_v47, 4  ;;  %v447_v54 = vsel %vm1608_vm10, %v393_v48, 0  ;;  %vm301_vm12 = vcmp.ne.s32.totalorder %v297_v6, %v1474_v31  ;;  %vm302_vm9 = vcmp.ne.s32.totalorder %v298_v8, %v1477_v35  ;;  %vm1651_vm8 = vmpackc.low %vm376_vm11, %vm375_vm2 }
  0x96   :  { %v672_v60 = vrot.slane %v447_v54, 4  ;;  %vm308_vm10 = vcmp.ne.s32.totalorder %v304_v13, %v1474_v31  ;;  %v2363_v20 = vmov 0  ;;  %v1662_v27 = vpop.permute.xlu2 %185  ;;  %vm1664_vm6 = vmpackc.low %vm302_vm9, %vm301_vm12  ;;  %vm2310_vm11 = vcmask 121856  }
  0x97   :  { %v729_v0 = vsel %vm2304_vm0, %v1369_v4, %v673_v52  ;;  %v612_v4 = vsel %vm610_vm3, 65537, %v1319_v12  ;;  %v2364_v20 = vsel %vm1651_vm8, 4294967295, %v2363_v20  ;;  %vm309_vm3 = vcmp.ne.s32.totalorder %v305_v15, %v1477_v35 }
  0x98   :  { %v725_v5 = vsel %vm2304_vm0, %v1361_v2, %v672_v60  ;;  %814 = vmatpush.bf16.msra.mxu3 %v729_v0  ;;  %vm1644_vm0 = vmpackc.low %vm369_vm13, %vm368_vm5  ;;  %v614_v25 = vperm.slane %v612_v4, 0  ;;  %vm2365_vm5 = vmmov 1   ;;  %v615_v26 = vperm.slane %v612_v4, 4 }
  0x99   :  { %801 = vmatpush.bf16.msra.mxu2 %v725_v5  ;;  %v2362_v17 = vsel %vm1644_vm0, 4294967295, %v2361_v17  ;;  %vm543_vm13 = vmpackc.low %vm1620_vm4, %vm2365_vm5  ;;  %v2367_v29 = vsel %vm1664_vm6, 4294967295, %v2366_v29  ;;  %vm2315_vm12 = vcmp.ge.s32.totalorder %v1586_v28, 1 }
  0x9a   :  { %v322_v14 = vpop.permute.xlu1 %321  ;;  %vm1672_vm2 = vmpackc.low %vm309_vm3, %vm308_vm10  ;;  %v618_v38 = vunpack.c.l.b16 %v614_v25  ;;  %v619_v42 = vunpack.c.h.b16 %v614_v25  ;;  %v1680_v43 = vsel %vm543_vm13, 65537, %v1319_v12  ;;  %v625_v47 = vunpack.c.l.b16 %v615_v26 }
  0x9b   :  { %v320_v2 = vpop.permute.xlu0 %319  ;;  %v2369_v34 = vsel %vm1672_vm2, 4294967295, %v2368_v34  ;;  %v626_v48 = vunpack.c.h.b16 %v615_v26  ;;  %vm2370_vm10 = vcmp.ge.s32.totalorder %v1451_v19, 1  ;;  %vm2371_vm3 = vcmask 1043456  }
  0x9c   :  { %v325_v21 = vsel %vm2309_vm15, %v1480_v39, %v320_v2  ;;  %v326_v22 = vsel %vm2309_vm15, %v320_v2, %v322_v14  ;;  %vm209_vm15 = vmpackc.low %vm2365_vm5, %vm1519_vm14  ;;  %v548_v19 = vperm.slane %v1680_v43, 4  ;;  %v547_v25 = vperm.slane %v1680_v43, 0 }
  0x9d   :  { %v380_v30 = vsel %vm1644_vm0, %v325_v21, 0  ;;  %v381_v33 = vsel %vm1651_vm8, %v326_v22, 0  ;;  %vm81_vm9 = vmand %vm1519_vm14, %vm2370_vm10  ;;  %v211_v63 = vsel %vm209_vm15, 65537, %v1319_v12  ;;  %vm623_vm8 = vcmp.ne.s32.totalorder %v619_v42, %v1477_v35 }
  0x9e   :  { %v664_v51 = vrot.slane %v380_v30, 4  ;;  %v665_v52 = vrot.slane %v381_v33, 4  ;;  %vm2372_vm13 = vmmov %vm2371_vm3  ;;  %vm629_vm14 = vcmp.ne.s32.totalorder %v625_v47, %v1474_v31  ;;  %vm630_vm10 = vcmp.ne.s32.totalorder %v626_v48, %v1477_v35  ;;  %v1713_v6 = vpop.permute.xlu2 %518 }
  0x9f   :  { %vm2373_vm15 = vcmp.ge.s32.totalorder %v1447_v18, 1  ;;  %v214_v57 = vperm.slane %v211_v63, 0  ;;  %v215_v5 = vperm.slane %v211_v63, 4  ;;  %vm1717_vm0 = vmpackc.low %vm630_vm10, %vm629_vm14  ;;  %v2376_v18 = vmov 0 }
  0xa0   :  { %v2377_v18 = vsel %vm1717_vm0, 4294967295, %v2376_v18  ;;  %v558_v14 = vunpack.c.l.b16 %v548_v19  ;;  %v559_v15 = vunpack.c.h.b16 %v548_v19  ;;  %vm2383_vm10 = vcmask 1043456  }
  0xa1   :  { %v230_v4 = vunpack.c.l.b16 %v214_v57  ;;  %v237_v26 = vunpack.c.l.b16 %v215_v5  ;;  %v1748_v43 = vunpack.c.l.b16 %v547_v25 }
  0xa2   :  { %v255_v37 = vpop.permute.xlu1 %254 }
  0xa3   :  { %v253_v46 = vpop.permute.xlu0 %252  ;;  %vm241_vm1 = vcmp.ne.s32.totalorder %v237_v26, %v1474_v31 }
  0xa4   :  { %v258_v54 = vsel %vm2310_vm11, %v1554_v10, %v253_v46  ;;  %v259_v55 = vsel %vm2310_vm11, %v253_v46, %v255_v37  ;;  %vm622_vm11 = vcmp.ne.s32.totalorder %v618_v38, %v1474_v31  ;;  %v231_v38 = vunpack.c.h.b16 %v214_v57 }
  0xa5   :  { %v313_v60 = vsel %vm1664_vm6, %v258_v54, 0  ;;  %v314_v61 = vsel %vm1672_vm2, %v259_v55, 0  ;;  %vm142_vm2 = vmpackc.low %vm2373_vm15, %vm81_vm9  ;;  %vm1724_vm9 = vcmp.ge.s32.totalorder %v63_v24, 16  ;;  %v2390_v55 = vmov 0 }
  0xa6   :  { %v709_v0 = vsel %vm2371_vm3, %v313_v60, %v664_v51  ;;  %v713_v1 = vsel %vm2372_vm13, %v314_v61, %v665_v52  ;;  %vm2316_vm3 = vcmp.ge.s32.totalorder %v1605_v36, 1  ;;  %vm96_vm13 = vmand %vm1620_vm4, %vm2315_vm12  ;;  %v144_v13 = vsel %vm142_vm2, 65537, %v1319_v12  ;;  %v120_v19 = vpop.permute.xlu2 %119 }
  0xa7   :  { %802 = vmatpush.bf16.msra.mxu2 %v709_v0  ;;  %815 = vmatpush.bf16.msra.mxu3 %v713_v1  ;;  %vm1709_vm6 = vmpackc.low %vm623_vm8, %vm622_vm11  ;;  %vm2380_vm4 = vcmask 908288   ;;  %v148_v30 = vperm.slane %v144_v13, 4  ;;  %vm2382_vm2 = vcmp.le.s32.totalorder %v1605_v36, 14  ;;  %v147_v42 = vperm.slane %v144_v13, 0 }
  0xa8   :  { %vm476_vm8 = vmpackc.low %vm96_vm13, %vm2316_vm3  ;;  %vm562_vm13 = vcmp.ne.s32.totalorder %v558_v14, %v1474_v31  ;;  %vm234_vm3 = vcmp.ne.s32.totalorder %v230_v4, %v1474_v31  ;;  %v552_v61 = vunpack.c.h.b16 %v547_v25 }
  0xa9   :  { %vm2381_vm11 = vmmov %vm2380_vm4  ;;  %v478_v37 = vsel %vm476_vm8, 65537, %v1319_v12  ;;  %v170_v47 = vunpack.c.l.b16 %v148_v30  ;;  %v171_v48 = vunpack.c.h.b16 %v148_v30  ;;  %vm2388_vm8 = vcmp.le.s32.totalorder %v1605_v36, 14 }
  0xaa   :  { %v1715_v8 = vpop.permute.xlu1 %183  ;;  %vm87_vm14 = vmand %vm1724_vm9, %vm2382_vm2  ;;  %v480_v51 = vperm.slane %v478_v37, 0  ;;  %v481_v54 = vperm.slane %v478_v37, 4  ;;  %v163_v63 = vunpack.c.l.b16 %v147_v42  ;;  %v164_v0 = vunpack.c.h.b16 %v147_v42 }
  0xab   :  { %v586_v2 = vpop.permute.xlu0 %585  ;;  %vm2384_vm15 = vmmov %vm2383_vm10  ;;  %v2400_v30 = vmov 0  ;;  %v2402_v37 = vmov 0 }
  0xac   :  { %v592_v21 = vsel %vm2380_vm4, %v1631_v59, %v586_v2  ;;  %v593_v22 = vsel %vm2381_vm11, %v586_v2, %v1484_v44  ;;  %v238_v44 = vunpack.c.h.b16 %v215_v5  ;;  %vm563_vm4 = vcmp.ne.s32.totalorder %v559_v15, %v1477_v35 }
  0xad   :  { %v646_v11 = vsel %vm1709_vm6, %v592_v21, 0  ;;  %v647_v24 = vsel %vm1717_vm0, %v593_v22, 0  ;;  %vm2385_vm11 = vcmp.le.s32.totalorder %v1586_v28, 14  ;;  %v484_v14 = vunpack.c.l.b16 %v480_v51 }
  0xae   :  { %v759_v59 = vsel %vm2383_vm10, %v646_v11, 0  ;;  %v762_v33 = vsel %vm2384_vm15, %v647_v24, 0  ;;  %vm1752_vm2 = vmpackc.low %vm2385_vm11, %vm87_vm14  ;;  %vm2319_vm10 = vcmask 130048   ;;  %vm242_vm7 = vcmp.ne.s32.totalorder %v238_v44, %v1477_v35 }
  0xaf   :  { %773 = vmatpush.bf16.msra.mxu0 %v759_v59  ;;  %786 = vmatpush.bf16.msra.mxu1 %v762_v33  ;;  %vm2389_vm15 = vmmov %vm2385_vm11  ;;  %v1783_v5 = vsel %vm1752_vm2, 65537, %v1319_v12  ;;  %vm2397_vm2 = vcmp.ne.s32.totalorder %v231_v38, %v1477_v35  ;;  %v2398_v15 = vmov 0  ;;  %v191_v2 = vsel %vm2319_vm10, %v1715_v8, %v1662_v27 }
  0xb0   :  { %vm409_vm12 = vmpackc.low %vm2389_vm15, %vm2388_vm8  ;;  %vm2392_vm8 = vcmask 916480   ;;  %v485_v21 = vunpack.c.h.b16 %v480_v51  ;;  %v491_v22 = vunpack.c.l.b16 %v481_v54  ;;  %v492_v25 = vunpack.c.h.b16 %v481_v54 }
  0xb1   :  { %vm1763_vm14 = vmpackc.low %vm563_vm4, %vm562_vm13  ;;  %v1771_v1 = vsel %vm2392_vm8, %v1713_v6, %v1482_v40  ;;  %v411_v57 = vsel %vm409_vm12, 65537, %v1319_v12  ;;  %vm2393_vm13 = vcmp.ge.s32.totalorder %v1605_v36, 1  ;;  %vm2394_vm4 = vcmp.ge.s32.totalorder %v1586_v28, 1 }
  0xb2   :  { %v517_v52 = vpop.permute.xlu1 %516  ;;  %v2391_v55 = vsel %vm1763_vm14, 4294967295, %v2390_v55  ;;  %vm342_vm11 = vmpackc.low %vm2394_vm4, %vm2393_vm13  ;;  %v2395_v40 = vmov 0  ;;  %vm174_vm12 = vcmp.ne.s32.totalorder %v170_v47, %v1474_v31  ;;  %vm175_vm13 = vcmp.ne.s32.totalorder %v171_v48, %v1477_v35 }
  0xb3   :  { %v188_v60 = vpop.permute.xlu0 %187  ;;  %vm1789_vm8 = vmpackc.low %vm242_vm7, %vm241_vm1  ;;  %vm167_vm7 = vcmp.ne.s32.totalorder %v163_v63, %v1474_v31  ;;  %vm168_vm1 = vcmp.ne.s32.totalorder %v164_v0, %v1477_v35  ;;  %v413_v11 = vperm.slane %v411_v57, 0  ;;  %v1811_v4 = vsel %vm342_vm11, 65537, %v1319_v12 }
  0xb4   :  { %v2396_v40 = vsel %vm1789_vm8, 4294967295, %v2395_v40  ;;  %v192_v13 = vsel %vm2319_vm10, %v1662_v27, %v188_v60  ;;  %vm1801_vm4 = vmpackc.low %vm2397_vm2, %vm234_vm3  ;;  %v580_v24 = vsel %vm1763_vm14, %v1771_v1, 0  ;;  %vm488_vm11 = vcmp.ne.s32.totalorder %v484_v14, %v1474_v31 }
  0xb5   :  { %v2399_v15 = vsel %vm1801_vm4, 4294967295, %v2398_v15  ;;  %v247_v26 = vsel %vm1789_vm8, %v192_v13, 0  ;;  %v246_v27 = vsel %vm1801_vm4, %v191_v2, 0  ;;  %vm1825_vm10 = vmpackc.low %vm175_vm13, %vm174_vm12  ;;  %v414_v59 = vperm.slane %v411_v57, 4 }
  0xb6   :  { %v2401_v30 = vsel %vm1825_vm10, 4294967295, %v2400_v30  ;;  %v280_v33 = vperm.slane %v1783_v5, 4  ;;  %vm1831_vm15 = vmpackc.low %vm168_vm1, %vm167_vm7  ;;  %vm489_vm3 = vcmp.ne.s32.totalorder %v485_v21, %v1477_v35  ;;  %v347_v38 = vperm.slane %v1811_v4, 4 }
  0xb7   :  { %v2403_v37 = vsel %vm1831_vm15, 4294967295, %v2402_v37  ;;  %v657_v42 = vrot.slane %v247_v26, 4  ;;  %vm2404_vm12 = vcmask 138240   ;;  %v417_v48 = vunpack.c.l.b16 %v413_v11  ;;  %vm1846_vm13 = vmpackc.low %vm2365_vm5, %vm1724_vm9  ;;  %v1860_v26 = vpop.permute.xlu2 %382 }
  0xb8   :  { %v346_v51 = vperm.slane %v1811_v4, 0  ;;  %v656_v60 = vrot.slane %v246_v27, 4  ;;  %vm2407_vm7 = vmmov %vm2404_vm12  ;;  %v418_v1 = vunpack.c.h.b16 %v413_v11  ;;  %vm2408_vm1 = vcmask 1043456  }
  0xb9   :  { %v424_v2 = vunpack.c.l.b16 %v414_v59  ;;  %v425_v4 = vunpack.c.h.b16 %v414_v59  ;;  %vm2409_vm5 = vcmp.ne.s32.totalorder %v1748_v43, %v1474_v31  ;;  %vm2413_vm8 = vcmask 916480   ;;  %vm2414_vm2 = vmmov %vm2408_vm1 }
  0xba   :  { %v118_v44 = vpop.permute.xlu1 %117  ;;  %v525_v27 = vsel %vm2413_vm8, %v517_v52, %v1713_v6  ;;  %v210_v59 = vsel %vm1846_vm13, 65537, %v1319_v12  ;;  %v350_v43 = vunpack.c.l.b16 %v346_v51  ;;  %v679_v6 = vrot.slane %v580_v24, 4  ;;  %vm1891_vm8 = vmpackc.low %vm489_vm3, %vm488_vm11 }
  0xbb   :  { %v1839_v46 = vpop.permute.xlu0 %115  ;;  %v124_v47 = vsel %vm2404_vm12, %v118_v44, %v120_v19  ;;  %v748_v19 = vld [vmem:[%s2286_s2] sm:$0xff]  ;;  %vm2410_vm12 = vcmp.ne.s32.totalorder %v552_v61, %v1477_v35  ;;  %v351_v61 = vunpack.c.h.b16 %v346_v51  ;;  %v1895_v54 = vunpack.c.l.b16 %v280_v33 }
  0xbc   :  { %v123_v63 = vsel %vm2407_vm7, %v1839_v46, %v118_v44  ;;  %v180_v0 = vsel %vm1825_vm10, %v124_v47, 0  ;;  %751 = vperm.xlu2 %1227, %v748_v19   ;;  %vm1867_vm7 = vmpackc.low %vm2410_vm12, %vm2409_vm5  ;;  %vm2415_vm5 = vcmp.ge.s32.totalorder %v1605_v36, 1  ;;  %v1897_v51 = vunpack.c.h.b16 %v280_v33 }
  0xbd   :  { %v179_v57 = vsel %vm1831_vm15, %v123_v63, 0  ;;  %v697_v13 = vsel %vm2408_vm1, %v180_v0, %v657_v42  ;;  %v1877_v42 = vld [vmem:[#allocation2] sm:$0xf]  ;;  %vm2322_vm1 = vcmask 588800   ;;  %vm1883_vm12 = vmand %vm1724_vm9, %vm2415_vm5  ;;  %v579_v36 = vsel %vm1867_vm7, %v525_v27, 0 }
  0xbe   :  { %v693_v44 = vsel %vm2414_vm2, %v179_v57, %v656_v60  ;;  %816 = vmatpush.bf16.msra.mxu3 %v697_v13  ;;  %vm2420_vm9 = vcmp.ne.s32.totalorder %v491_v22, %v1474_v31  ;;  %vm2421_vm2 = vcmp.ne.s32.totalorder %v492_v25, %v1477_v35  ;;  %v357_v14 = vunpack.c.l.b16 %v347_v38 }
  0xbf   :  { %803 = vmatpush.bf16.msra.mxu2 %v693_v44  ;;  %vm1905_vm13 = vmpackc.low %vm2421_vm2, %vm2420_vm9  ;;  %v212_v21 = vperm.slane %v210_v59, 0  ;;  %v279_v22 = vperm.slane %v1783_v5, 0  ;;  %vm2424_vm9 = vcmp.ge.s32.totalorder %v1586_v28, 1  ;;  %vm2425_vm3 = vcmask 924672  }
  0xc0   :  { %v2423_v49 = vsel %vm1905_vm13, 4294967295, %v2422_v49  ;;  %vm141_vm2 = vmpackc.low %vm2424_vm9, %vm1883_vm12  ;;  %v358_v60 = vunpack.c.h.b16 %v347_v38  ;;  %v678_v63 = vrot.slane %v579_v36, 4  ;;  %v213_v19 = vperm.slane %v210_v59, 4 }
  0xc1   :  { %1209 = vmatmul.msk.bf16.vlgmr.msra.gmra.mxu3 %vm2322_vm1, %v1877_v42  ;;  %vm2426_vm10 = vmmov %vm2425_vm3  ;;  %vm2427_vm12 = vcmask 1043456   ;;  %v216_v13 = vunpack.c.l.b16 %v212_v21  ;;  %v217_v44 = vunpack.c.h.b16 %v212_v21  ;;  %v283_v38 = vunpack.c.l.b16 %v279_v22 }
  0xc2   :  { %v452_v24 = vpop.permute.xlu1 %451  ;;  %1208 = vmatmul.msk.bf16.vlgmr.msra.gmra.mxu2 %vm2322_vm1, %v1877_v42  ;;  %v284_v47 = vunpack.c.h.b16 %v279_v22  ;;  %vm2430_vm9 = vcmp.ne.s32.totalorder %v418_v1, %v1477_v35  ;;  %v2431_v59 = vmov 0  ;;  %vm362_vm5 = vcmp.ne.s32.totalorder %v358_v60, %v1477_v35 }
  0xc3   :  { %v450_v25 = vpop.permute.xlu0 %449  ;;  %v459_v33 = vsel %vm2425_vm3, %v452_v24, %v1444_v16  ;;  %v143_v16 = vsel %vm141_vm2, 65537, %v1319_v12  ;;  %vm2428_vm3 = vmmov %vm2427_vm12  ;;  %vm2433_vm2 = vcmp.ne.s32.totalorder %v424_v2, %v1474_v31  ;;  %v2435_v36 = vmov 0 }
  0xc4   :  { %v458_v5 = vsel %vm2426_vm10, %v450_v25, %v452_v24  ;;  %v513_v0 = vsel %vm1905_vm13, %v459_v33, 0  ;;  %vm2429_vm10 = vcmp.ne.s32.totalorder %v417_v48, %v1474_v31  ;;  %v145_v12 = vperm.slane %v143_v16, 0 }
  0xc5   :  { %v512_v28 = vsel %vm1891_vm8, %v458_v5, 0  ;;  %v737_v57 = vsel %vm2427_vm12, %v513_v0, %v679_v6  ;;  %vm1938_vm1 = vmpackc.low %vm2430_vm9, %vm2429_vm10  ;;  %vm361_vm12 = vcmp.ne.s32.totalorder %v357_v14, %v1474_v31  ;;  %v249_v6 = vpop.permute.xlu2 %248  ;;  %v146_v48 = vperm.slane %v143_v16, 4 }
  0xc6   :  { %v733_v27 = vsel %vm2428_vm3, %v512_v28, %v678_v63  ;;  %787 = vmatpush.bf16.msra.mxu1 %v737_v57  ;;  %v2432_v59 = vsel %vm1938_vm1, 4294967295, %v2431_v59  ;;  %vm2434_vm3 = vcmp.ne.s32.totalorder %v425_v4, %v1477_v35  ;;  %vm2437_vm9 = vcmask 121856  }
  0xc7   :  { %774 = vmatpush.bf16.msra.mxu0 %v733_v27  ;;  %vm1948_vm11 = vmpackc.low %vm2434_vm3, %vm2433_vm2  ;;  %v265_v1 = vsel %vm2437_vm9, 0, %v249_v6  ;;  %vm2438_vm15 = vcmp.ne.s32.totalorder %v350_v43, %v1474_v31  ;;  %vm2439_vm4 = vcmp.ne.s32.totalorder %v351_v61, %v1477_v35  ;;  %v2440_v14 = vmov 0 }
  0xc8   :  { %v2436_v36 = vsel %vm1948_vm11, 4294967295, %v2435_v36  ;;  %vm1959_vm13 = vmpackc.low %vm2439_vm4, %vm2438_vm15  ;;  %v223_v2 = vunpack.c.l.b16 %v213_v19  ;;  %vm295_vm2 = vcmp.ne.s32.totalorder %v1897_v51, %v1477_v35  ;;  %v2442_v4 = vmov 0 }
  0xc9   :  { %v2441_v14 = vsel %vm1959_vm13, 4294967295, %v2440_v14  ;;  %vm1966_vm3 = vmpackc.low %vm362_vm5, %vm361_vm12  ;;  %v224_v43 = vunpack.c.h.b16 %v213_v19  ;;  %vm287_vm10 = vcmp.ne.s32.totalorder %v283_v38, %v1474_v31  ;;  %vm288_vm15 = vcmp.ne.s32.totalorder %v284_v47, %v1477_v35 }
  0xca   :  { %v2443_v4 = vsel %vm1966_vm3, 4294967295, %v2442_v4  ;;  %v316_v21 = vpop.permute.xlu1 %315  ;;  %vm2444_vm4 = vcmask 7168   ;;  %v149_v25 = vunpack.c.l.b16 %v145_v12  ;;  %v150_v33 = vunpack.c.h.b16 %v145_v12 }
  0xcb   :  { %v385_v61 = vpop.permute.xlu0 %384  ;;  %v324_v24 = vsel %vm2444_vm4, %v316_v21, %v1480_v39  ;;  %vm2445_vm14 = vmmov %vm2444_vm4  ;;  %vm2446_vm5 = vcmask 1039360   ;;  %v156_v0 = vunpack.c.l.b16 %v146_v48  ;;  %v2448_v57 = vmov 0 }
  0xcc   :  { %v332_v22 = vsel %vm2445_vm14, 0, %v316_v21  ;;  %v391_v60 = vsel %vm2446_vm5, %v1860_v26, %v385_v61  ;;  %vm2447_vm12 = vmmov %vm2446_vm5  ;;  %v379_v28 = vsel %vm1966_vm3, %v324_v24, 0  ;;  %v157_v26 = vunpack.c.h.b16 %v146_v48 }
  0xcd   :  { %v392_v63 = vsel %vm2447_vm12, %v385_v61, %v1614_v45  ;;  %v378_v5 = vsel %vm1959_vm13, %v332_v22, 0  ;;  %v445_v19 = vsel %vm1938_vm1, %v391_v60, 0  ;;  %vm1988_vm14 = vmpackc.low %vm288_vm15, %vm287_vm10  ;;  %vm227_vm4 = vcmp.ne.s32.totalorder %v223_v2, %v1474_v31 }
  0xce   :  { %v446_v39 = vsel %vm1948_vm11, %v392_v63, 0  ;;  %v2449_v57 = vsel %vm1988_vm14, 4294967295, %v2448_v57  ;;  %v670_v16 = vrot.slane %v445_v19, 4  ;;  %vm228_vm5 = vcmp.ne.s32.totalorder %v224_v43, %v1477_v35  ;;  %vm2450_vm12 = vmmov %vm2437_vm9 }
  0xcf   :  { %v671_v45 = vrot.slane %v446_v39, 4  ;;  %v257_v27 = vsel %vm2450_vm12, %v249_v6, %v1554_v10  ;;  %v662_v38 = vrot.slane %v378_v5, 4  ;;  %vm2451_vm9 = vcmp.ne.s32.totalorder %v1895_v54, %v1474_v31  ;;  %v1229_v54 = vld [vmem:[%s2284_s0 + $0x8] sm:$0xff] }
  0xd0   :  { %vm2002_vm10 = vmpackc.low %vm295_vm2, %vm2451_vm9  ;;  %vm153_vm15 = vcmp.ne.s32.totalorder %v149_v25, %v1474_v31  ;;  %vm154_vm3 = vcmp.ne.s32.totalorder %v150_v33, %v1477_v35  ;;  %v663_v12 = vrot.slane %v379_v28, 4  ;;  %vm2454_vm13 = vcmask 1043456  }
  0xd1   :  { %v717_v48 = vsel %vm2454_vm13, %v1394_v9, %v670_v16  ;;  %vm2455_vm12 = vmmov %vm2454_vm13  ;;  %vm2456_vm11 = vcmp.ne.s32.totalorder %v216_v13, %v1474_v31  ;;  %vm2457_vm0 = vcmp.ne.s32.totalorder %v217_v44, %v1477_v35  ;;  %v311_v51 = vsel %vm1988_vm14, %v265_v1, 0 }
  0xd2   :  { %v721_v10 = vsel %vm2455_vm12, %v1380_v7, %v671_v45  ;;  %vm2016_vm1 = vmpackc.low %vm2457_vm0, %vm2456_vm11  ;;  %775 = vmatpush.bf16.msra.mxu0 %v717_v48  ;;  %vm160_vm13 = vcmp.ne.s32.totalorder %v156_v0, %v1474_v31  ;;  %vm161_vm9 = vcmp.ne.s32.totalorder %v157_v26, %v1477_v35  ;;  %v114_v7 = vpop.permute.xlu1 %113  ;;  %vm2464_vm0 = vcmask 138240  }
  0xd3   :  { %788 = vmatpush.bf16.msra.mxu1 %v721_v10  ;;  %vm2022_vm2 = vmpackc.low %vm228_vm5, %vm227_vm4  ;;  %v182_v13 = vpop.permute.xlu0 %181  ;;  %v131_v44 = vsel %vm2464_vm0, 0, %v114_v7  ;;  %vm2465_vm11 = vcmask 1043456   ;;  %v312_v2 = vsel %vm2002_vm10, %v257_v27, 0  ;;  %vm2466_vm4 = vcmask 130048  }
  0xd4   :  { %vm2028_vm12 = vmpackc.low %vm154_vm3, %vm153_vm15  ;;  %v701_v1 = vsel %vm2465_vm11, %v311_v51, %v662_v38  ;;  %v190_v21 = vsel %vm2466_vm4, %v182_v13, %v1715_v8  ;;  %v56_v6 = vunpack.c.l.bf16 %v1229_v54 }
  0xd5   :  { %vm2467_vm5 = vmmov %vm2466_vm4  ;;  %v245_v22 = vsel %vm2022_vm2, %v190_v21, 0  ;;  %v177_v8 = vsel %vm2028_vm12, %v131_v44, 0 }
  0xd6   :  { %v198_v31 = vsel %vm2467_vm5, 0, %v182_v13  ;;  %vm2468_vm14 = vmmov %vm2464_vm0  ;;  %776 = vmatpush.bf16.msra.mxu0 %v701_v1  ;;  %v655_v33 = vrot.slane %v245_v22, 4  ;;  %vm2478_vm5 = vcmask 916480  }
  0xd7   :  { %v122_v35 = vsel %vm2468_vm14, %v114_v7, %v1839_v46  ;;  %vm2469_vm3 = vmmov %vm2465_vm11  ;;  %v244_v24 = vsel %vm2016_vm1, %v198_v31, 0  ;;  %vm2476_vm11 = vcmask 908288  }
  0xd8   :  { %v705_v43 = vsel %vm2469_vm3, %v312_v2, %v663_v12  ;;  %vm2042_vm15 = vmpackc.low %vm161_vm9, %vm160_vm13  ;;  %v654_v25 = vrot.slane %v244_v24, 4  ;;  %vm2474_vm9 = vcmask 588800  }
  0xd9   :  { %789 = vmatpush.bf16.msra.mxu1 %v705_v43  ;;  %v178_v46 = vsel %vm2042_vm15, %v122_v35, 0  ;;  %vm2472_vm14 = vmmov %vm2469_vm3 }
  0xda   :  { %v685_v60 = vsel %vm2472_vm14, %v177_v8, %v654_v25  ;;  %vm2473_vm13 = vmmov %vm2469_vm3  ;;  %v1103_v25 = vld [vmem:[%s2288_s4] sm:$0xff]  ;;  %vm2481_vm14 = vcmask 1039360  }
  0xdb   :  { %v689_v63 = vsel %vm2473_vm13, %v178_v46, %v655_v33  ;;  %777 = vmatpush.bf16.msra.mxu0 %v685_v60  ;;  %vm2475_vm0 = vmmov %vm2474_vm9 }
  0xdc   :  { %vm2477_vm4 = vmmov %vm2469_vm3  ;;  %vm2479_vm3 = vcmask 924672  }
  0xdd   :  { %790 = vmatpush.bf16.msra.mxu1 %v689_v63  ;;  %vm2483_vm13 = vmmov %vm2477_vm4 }
  0xde   :  { %1206 = vmatmul.msk.bf16.vlgmr.msra.gmra.mxu0 %vm2474_vm9, %v1877_v42 }
  0xe0   :  { %1207 = vmatmul.msk.bf16.vlgmr.msra.gmra.mxu1 %vm2475_vm0, %v1877_v42 }
 0x116   :  { %v752_v28 = vpop.permute.xlu2 %751 }
 0x144   :  { %v818_v5 = vpop.f32.mrf.mxu3 }
 0x145   :  { %v805_v0 = vpop.f32.mrf.mxu2  ;;  %v819_v2 = vadd.f32 %v818_v5, %v752_v28 }
 0x146   :  { %v806_v42 = vadd.f32 %v805_v0, %v752_v28 }
 0x147   :  { %v825_v31 = vmax.f32 %v819_v2, 0.0 }
 0x148   :  { %v824_v21 = vmax.f32 %v806_v42, 0.0 }
 0x14a   :  { %v827_v35 = vpack.c.bf16 %v825_v31, %v824_v21 }
 0x14c   :  { %v820_v19 = vpop.f32.mrf.mxu3  ;;  %v832_v43 = vunpack.c.l.b16 %v827_v35  ;;  %v833_v24 = vunpack.c.h.b16 %v827_v35 }
 0x14d   :  { %v807_v39 = vpop.f32.mrf.mxu2 }
 0x14e   :  { %v2088_v22 = vpack.c.b16 %v832_v43, %v832_v43  ;;  %v2090_v8 = vpack.c.b16 %v833_v24, %v833_v24 }
 0x15b   :  { %v779_v26 = vpop.f32.mrf.mxu0 }
 0x15c   :  { %v780_v45 = vadd.f32 %v779_v26, %v752_v28 }
 0x15d   :  { %v792_v16 = vpop.f32.mrf.mxu1 }
 0x15e   :  { %v793_v27 = vadd.f32 %v792_v16, %v752_v28  ;;  %v822_v38 = vmax.f32 %v780_v45, 0.0 }
 0x160   :  { %v823_v12 = vmax.f32 %v793_v27, 0.0 }
 0x162   :  { %v826_v48 = vpack.c.bf16 %v823_v12, %v822_v38 }
 0x163   :  { %v781_v7 = vpop.f32.mrf.mxu0 }
 0x164   :  { %v830_v10 = vunpack.c.l.b16 %v826_v48  ;;  %v831_v51 = vunpack.c.h.b16 %v826_v48 }
 0x165   :  { %v794_v13 = vpop.f32.mrf.mxu1 }
 0x166   :  { %v2060_v44 = vpack.c.b16 %v830_v10, %v830_v10  ;;  %v2062_v1 = vpack.c.b16 %v831_v51, %v831_v51 }
 0x168   :  { %987 = vrot.lane.b32.xlu0 %v2062_v1, %s1313_s30  ;;  %964 = vrot.lane.b32.xlu1 %v2060_v44, %s1312_s3 }
 0x169   :  { %985 = vrot.lane.b32.xlu2 %v2060_v44, %s1313_s30 }
 0x170   :  { %903 = vrot.lane.b32.xlu0 %v2062_v1, %s1315_s9  ;;  %945 = vrot.lane.b32.xlu1 %v2062_v1, %s1311_s29 }
 0x171   :  { %966 = vrot.lane.b32.xlu2 %v2062_v1, %s1312_s3 }
 0x178   :  { %943 = vrot.lane.b32.xlu0 %v2060_v44, %s1311_s29  ;;  %861 = vrot.lane.b32.xlu1 %v2062_v1, %s1317_s11 }
 0x179   :  { %882 = vrot.lane.b32.xlu2 %v2062_v1, %s1316_s10 }
 0x180   :  { %924 = vrot.lane.b32.xlu0 %v2062_v1, %s1314_s8  ;;  %840 = vrot.lane.b32.xlu1 %v2062_v1, %s1318_s12 }
 0x181   :  { %922 = vrot.lane.b32.xlu2 %v2060_v44, %s1314_s8 }
 0x188   :  { %989 = vrot.lane.b32.xlu0 %v2088_v22, %s1313_s30  ;;  %991 = vrot.lane.b32.xlu1 %v2090_v8, %s1313_s30 }
 0x189   :  { %968 = vrot.lane.b32.xlu2 %v2088_v22, %s1312_s3 }
 0x190   :  { %970 = vrot.lane.b32.xlu0 %v2090_v8, %s1312_s3  ;;  %947 = vrot.lane.b32.xlu1 %v2088_v22, %s1311_s29 }
 0x191   :  { %949 = vrot.lane.b32.xlu2 %v2090_v8, %s1311_s29 }
 0x198   :  { %926 = vrot.lane.b32.xlu0 %v2088_v22, %s1314_s8  ;;  %928 = vrot.lane.b32.xlu1 %v2090_v8, %s1314_s8 }
 0x199   :  { %907 = vrot.lane.b32.xlu2 %v2090_v8, %s1315_s9 }
 0x1a0   :  { %884 = vrot.lane.b32.xlu0 %v2088_v22, %s1316_s10  ;;  %905 = vrot.lane.b32.xlu1 %v2088_v22, %s1315_s9 }
 0x1a1   :  { %863 = vrot.lane.b32.xlu2 %v2088_v22, %s1317_s11 }
 0x1a8   :  { %865 = vrot.lane.b32.xlu0 %v2090_v8, %s1317_s11  ;;  %886 = vrot.lane.b32.xlu1 %v2090_v8, %s1316_s10 }
 0x1a9   :  { %842 = vrot.lane.b32.xlu2 %v2088_v22, %s1318_s12 }
 0x1b0   :  { %844 = vrot.lane.b32.xlu0 %v2090_v8, %s1318_s12  ;;  %901 = vrot.lane.b32.xlu1 %v2060_v44, %s1315_s9 }
 0x1b1   :  { %880 = vrot.lane.b32.xlu2 %v2060_v44, %s1316_s10 }
 0x1b8   :  { %859 = vrot.lane.b32.xlu0 %v2060_v44, %s1317_s11  ;;  %838 = vrot.lane.b32.xlu1 %v2060_v44, %s1318_s12 }
 0x1b9   :  { %1106 = vperm.xlu2 %1227, %v1103_v25  }
 0x1c3   :  { %v986_v33 = vpop.permute.xlu2 %985 }
 0x1cb   :  { %v967_v46 = vpop.permute.xlu2 %966 }
 0x1d3   :  { %v2135_v60 = vpop.permute.xlu2 %882 }
 0x1da   :  { %v988_v63 = vpop.permute.xlu0 %987  ;;  %v965_v5 = vpop.permute.xlu1 %964 }
 0x1db   :  { %v993_v0 = vsel %vm2476_vm11, %v986_v33, %v988_v63  ;;  %v923_v28 = vpop.permute.xlu2 %922  ;;  %v972_v45 = vsel %vm2478_vm5, %v965_v5, %v967_v46 }
 0x1dc   :  { %v1002_v19 = vsel %vm1709_vm6, %v993_v0, 0  ;;  %v981_v27 = vsel %vm1867_vm7, %v972_v45, 0  ;;  %vm2480_vm6 = vmmov %vm2477_vm4  ;;  %vm2482_vm7 = vnez %v2432_v59 }
 0x1dd   :  { %v1113_v39 = vsel %vm2477_vm4, %v1002_v19, 0  ;;  %v1034_v10 = vrot.slane %v981_v27, 4  ;;  %vm2488_vm4 = vnez %v2377_v18 }
 0x1de   :  { %1127 = vmatpush.bf16.msrb.mxu0 %v1113_v39 }
 0x1e2   :  { %v2141_v26 = vpop.permute.xlu0 %903  ;;  %v946_v16 = vpop.permute.xlu1 %945 }
 0x1e3   :  { %v969_v38 = vpop.permute.xlu2 %968 }
 0x1ea   :  { %v944_v12 = vpop.permute.xlu0 %943  ;;  %v2146_v48 = vpop.permute.xlu1 %861 }
 0x1eb   :  { %v951_v3 = vsel %vm2479_vm3, %v944_v12, %v946_v16  ;;  %v950_v2 = vpop.permute.xlu2 %949  ;;  %vm2490_vm3 = vnez %v2344_v62 }
 0x1ec   :  { %v960_v51 = vsel %vm1891_vm8, %v951_v3, 0  ;;  %vm2484_vm8 = vmmov %vm2476_vm11 }
 0x1ed   :  { %v1088_v7 = vsel %vm2480_vm6, %v960_v51, %v1034_v10  ;;  %vm2485_vm9 = vmmov %vm2484_vm8 }
 0x1ee   :  { %1128 = vmatpush.bf16.msrb.mxu0 %v1088_v7  ;;  %vm2486_vm0 = vmmov %vm2484_vm8 }
 0x1ef   :  { %vm2487_vm11 = vmmov %vm2478_vm5  ;;  %vm2489_vm5 = vnez %v2342_v58 }
 0x1f0   :  { %v973_v5 = vsel %vm2487_vm11, %v967_v46, %v969_v38 }
 0x1f2   :  { %v925_v13 = vpop.permute.xlu0 %924  ;;  %v2152_v42 = vpop.permute.xlu1 %840 }
 0x1f3   :  { %v930_v11 = vsel %vm2481_vm14, %v923_v28, %v925_v13  ;;  %v908_v19 = vpop.permute.xlu2 %907  ;;  %vm2491_vm14 = vmmov %vm2480_vm6 }
 0x1f4   :  { %v939_v21 = vsel %vm2482_vm7, %v930_v11, 0  ;;  %vm2492_vm7 = vmmov %vm2480_vm6 }
 0x1f5   :  { %v1026_v31 = vrot.slane %v939_v21, 4 }
 0x1f7   :  { %v1072_v35 = vsel %vm2483_vm13, %v2060_v44, %v1026_v31  ;;  %vm2493_vm13 = vnez %v2391_v55 }
 0x1f8   :  { %1129 = vmatpush.bf16.msrb.mxu0 %v1072_v35  ;;  %v982_v46 = vsel %vm2493_vm13, %v973_v5, 0  ;;  %vm2504_vm13 = vnez %v2338_v56 }
 0x1f9   :  { %v1035_v18 = vrot.slane %v982_v46, 4 }
 0x1fa   :  { %v990_v43 = vpop.permute.xlu0 %989  ;;  %v992_v52 = vpop.permute.xlu1 %991 }
 0x1fb   :  { %v994_v24 = vsel %vm2484_vm8, %v988_v63, %v990_v43  ;;  %v995_v25 = vsel %vm2485_vm9, %v990_v43, %v992_v52  ;;  %v1000_v33 = vsel %vm2486_vm0, %v992_v52, 0  ;;  %vm2494_vm8 = vcmask 924672   ;;  %vm2495_vm9 = vmmov %vm2487_vm11 }
 0x1fc   :  { %v1003_v0 = vsel %vm2488_vm4, %v994_v24, 0  ;;  %v1004_v59 = vsel %vm2489_vm5, %v995_v25, 0  ;;  %v1005_v44 = vsel %vm2490_vm3, %v1000_v33, 0  ;;  %v958_v58 = vsel %vm2494_vm8, %v950_v2, 0  ;;  %vm2496_vm0 = vmmov %vm2495_vm9 }
 0x1fd   :  { %v1116_v39 = vsel %vm2480_vm6, %v1003_v0, 0  ;;  %v1119_v63 = vsel %vm2491_vm14, %v1004_v59, 0  ;;  %v1122_v28 = vsel %vm2492_vm7, %v1005_v44, 0  ;;  %vm2497_vm11 = vmmov %vm2494_vm8  ;;  %vm2499_vm5 = vnez %v2334_v50 }
 0x1fe   :  { %1140 = vmatpush.bf16.msrb.mxu1 %v1116_v39  ;;  %1153 = vmatpush.bf16.msrb.mxu2 %v1119_v63  ;;  %vm2498_vm4 = vmmov %vm2494_vm8  ;;  %vm2500_vm3 = vnez %v2336_v53  ;;  %vm2501_vm6 = vnez %v2423_v49 }
 0x1ff   :  { %1166 = vmatpush.bf16.msrb.mxu3 %v1122_v28  ;;  %vm2502_vm14 = vmmov %vm2492_vm7  ;;  %vm2503_vm7 = vnez %v2352_v23 }
 0x200   :  { %vm2505_vm8 = vmmov %vm2502_vm14 }
 0x202   :  { %v971_v45 = vpop.permute.xlu0 %970  ;;  %v948_v27 = vpop.permute.xlu1 %947 }
 0x203   :  { %v974_v62 = vsel %vm2495_vm9, %v969_v38, %v971_v45  ;;  %v979_v12 = vsel %vm2496_vm0, %v971_v45, 0  ;;  %v952_v10 = vsel %vm2497_vm11, %v946_v16, %v948_v27  ;;  %v953_v3 = vsel %vm2498_vm4, %v948_v27, %v950_v2  ;;  %v864_v2 = vpop.permute.xlu2 %863  ;;  %vm2506_vm9 = vmmov %vm2505_vm8 }
 0x204   :  { %v983_v51 = vsel %vm2499_vm5, %v974_v62, 0  ;;  %v984_v55 = vsel %vm2500_vm3, %v979_v12, 0  ;;  %v961_v7 = vsel %vm2501_vm6, %v952_v10, 0  ;;  %v962_v38 = vsel %vm2503_vm7, %v953_v3, 0  ;;  %vm2514_vm7 = vmmov %vm2505_vm8 }
 0x205   :  { %v1036_v11 = vrot.slane %v983_v51, 4  ;;  %v1037_v21 = vrot.slane %v984_v55, 4  ;;  %v1092_v31 = vsel %vm2502_vm14, %v961_v7, %v1035_v18  ;;  %v963_v16 = vsel %vm2504_vm13, %v958_v58, 0  ;;  %vm2513_vm14 = vmmov %vm2505_vm8  ;;  %v1102_v51 = vld [vmem:[#allocation5] sm:$0xf] }
 0x206   :  { %1141 = vmatpush.bf16.msrb.mxu1 %v1092_v31  ;;  %vm2507_vm0 = vcmask 1039360   ;;  %vm2510_vm5 = vnez %v2436_v36  ;;  %vm2511_vm3 = vnez %v2358_v41  ;;  %vm2512_vm6 = vnez %v2356_v32  ;;  %vm2515_vm13 = vmmov %vm2514_vm7 }
 0x207   :  { %v1096_v50 = vsel %vm2505_vm8, %v962_v38, %v1036_v11  ;;  %v1100_v53 = vsel %vm2506_vm9, %v963_v16, %v1037_v21  ;;  %vm2508_vm11 = vmmov %vm2507_vm0  ;;  %vm2516_vm8 = vcmask 130048   ;;  %vm2517_vm9 = vcmask 121856  }
 0x208   :  { %1154 = vmatpush.bf16.msrb.mxu2 %v1096_v50  ;;  %1167 = vmatpush.bf16.msrb.mxu3 %v1100_v53  ;;  %vm2509_vm4 = vmmov %vm2507_vm0  ;;  %v868_v32 = vsel %vm2516_vm8, %v2146_v48, %v864_v2 }
 0x209   :  { %vm2527_vm8 = vmmov %vm2517_vm9 }
 0x20a   :  { %v927_v49 = vpop.permute.xlu0 %926  ;;  %v929_v35 = vpop.permute.xlu1 %928 }
 0x20b   :  { %v931_v43 = vsel %vm2507_vm0, %v925_v13, %v927_v49  ;;  %v932_v52 = vsel %vm2508_vm11, %v927_v49, %v929_v35  ;;  %v937_v24 = vsel %vm2509_vm4, %v929_v35, 0  ;;  %v843_v36 = vpop.permute.xlu2 %842  ;;  %vm2518_vm0 = vcmask 7168  }
 0x20c   :  { %v940_v23 = vsel %vm2510_vm5, %v931_v43, 0  ;;  %v941_v56 = vsel %vm2511_vm3, %v932_v52, 0  ;;  %v942_v25 = vsel %vm2512_vm6, %v937_v24, 0  ;;  %vm2519_vm11 = vnez %v2362_v17  ;;  %vm2521_vm5 = vmmov %vm2518_vm0 }
 0x20d   :  { %v1027_v33 = vrot.slane %v940_v23, 4  ;;  %v1028_v5 = vrot.slane %v941_v56, 4  ;;  %v1029_v0 = vrot.slane %v942_v25, 4  ;;  %vm2520_vm4 = vcmask 138240  }
 0x20e   :  { %vm2522_vm3 = vnez %v2399_v15  ;;  %vm2523_vm6 = vnez %v2367_v29 }
 0x20f   :  { %v1076_v59 = vsel %vm2513_vm14, %v2062_v1, %v1027_v33  ;;  %v1080_v13 = vsel %vm2514_vm7, %v2088_v22, %v1028_v5  ;;  %v1084_v44 = vsel %vm2515_vm13, %v2090_v8, %v1029_v0  ;;  %v847_v8 = vsel %vm2520_vm4, %v2152_v42, %v843_v36  ;;  %vm2524_vm14 = vmmov %vm2514_vm7 }
 0x210   :  { %1142 = vmatpush.bf16.msrb.mxu1 %v1076_v59  ;;  %1155 = vmatpush.bf16.msrb.mxu2 %v1080_v13  ;;  %v878_v18 = vsel %vm2522_vm3, %v868_v32, 0  ;;  %vm2525_vm7 = vnez %v2364_v20  ;;  %vm2526_vm13 = vnez %v2403_v37  ;;  %vm2533_vm3 = vnez %v2396_v40 }
 0x211   :  { %1168 = vmatpush.bf16.msrb.mxu3 %v1084_v44  ;;  %v857_v17 = vsel %vm2526_vm13, %v847_v8, 0  ;;  %v1012_v62 = vrot.slane %v878_v18, 4  ;;  %vm2537_vm13 = vcmask 7168   ;;  %v57_v32 = vunpack.c.h.bf16 %v1229_v54  ;;  %v1230_v8 = vld [vmem:[%s2284_s0] sm:$0xff] }
 0x212   :  { %v885_v41 = vpop.permute.xlu0 %884  ;;  %v906_v39 = vpop.permute.xlu1 %905 }
 0x213   :  { %v889_v63 = vsel %vm2517_vm9, %v2135_v60, %v885_v41  ;;  %v910_v1 = vsel %vm2518_vm0, %v2141_v26, %v906_v39  ;;  %v911_v28 = vsel %vm2521_vm5, %v906_v39, %v908_v19  ;;  %vm2528_vm9 = vmmov %vm2524_vm14  ;;  %vm2529_vm0 = vnez %v2369_v34  ;;  %v881_v37 = vpop.permute.xlu2 %880 }
 0x214   :  { %v920_v22 = vsel %vm2519_vm11, %v910_v1, 0  ;;  %v899_v58 = vsel %vm2523_vm6, %v889_v63, 0  ;;  %v921_v27 = vsel %vm2525_vm7, %v911_v28, 0  ;;  %v1048_v15 = vsel %vm2528_vm9, %v857_v17, %v1012_v62  ;;  %vm2531_vm4 = vmmov %vm2528_vm9 }
 0x215   :  { %v1020_v46 = vrot.slane %v920_v22, 4  ;;  %v1021_v19 = vrot.slane %v921_v27, 4  ;;  %vm2530_vm11 = vcmask 130048   ;;  %vm2532_vm5 = vcmask 588800   ;;  %vm2534_vm6 = vmmov %vm2527_vm8 }
 0x216   :  { %v888_v11 = vsel %vm2534_vm6, %v881_v37, %v2135_v60  ;;  %vm2536_vm7 = vcmask 138240   ;;  %vm2539_vm9 = vnez %v2441_v14  ;;  %v54_v28 = vunpack.c.l.bf16 %v1230_v8 }
 0x217   :  { %v1064_v45 = vsel %vm2524_vm14, %v899_v58, %v1020_v46  ;;  %vm2535_vm14 = vmmov %vm2534_vm6  ;;  %v55_v46 = vunpack.c.h.bf16 %v1230_v8 }
 0x218   :  { %1156 = vmatpush.bf16.msrb.mxu2 %v1064_v45  ;;  %v895_v21 = vsel %vm2535_vm14, 0, %v881_v37  ;;  %vm2545_vm14 = vcmask 588800  }
 0x21a   :  { %v866_v12 = vpop.permute.xlu0 %865  ;;  %v887_v10 = vpop.permute.xlu1 %886 }
 0x21b   :  { %v890_v3 = vsel %vm2527_vm8, %v885_v41, %v887_v10  ;;  %v869_v20 = vsel %vm2530_vm11, %v864_v2, %v866_v12  ;;  %vm2538_vm8 = vmmov %vm2537_vm13  ;;  %vm2541_vm11 = vnez %v2401_v30  ;;  %v1107_v9 = vpop.permute.xlu2 %1106 }
 0x21c   :  { %1157 = vmatpush.bf16.msrb.mxu2 %v1048_v15  ;;  %v900_v29 = vsel %vm2529_vm0, %v890_v3, 0  ;;  %v879_v7 = vsel %vm2533_vm3, %v869_v20, 0  ;;  %vm2540_vm0 = vnez %v2443_v4  ;;  %vm2543_vm3 = vmmov %vm2531_vm4 }
 0x21d   :  { %v1068_v55 = vsel %vm2531_vm4, %v900_v29, %v1021_v19  ;;  %v1013_v38 = vrot.slane %v879_v7, 4  ;;  %vm2544_vm6 = vmmov %vm2543_vm3 }
 0x21e   :  { %1169 = vmatpush.bf16.msrb.mxu3 %v1068_v55 }
 0x21f   :  { %1212 = vmatmul.msk.bf16.vlgmr.msrb.gmra.mxu2 %vm2532_vm5, %v1102_v51  ;;  %vm2542_vm5 = vnez %v2449_v57 }
 0x220   :  { %v897_v52 = vsel %vm2542_vm5, %v895_v21, 0 }
 0x222   :  { %v845_v31 = vpop.permute.xlu0 %844  ;;  %v902_v34 = vpop.permute.xlu1 %901 }
 0x223   :  { %v848_v16 = vsel %vm2536_vm7, %v843_v36, %v845_v31  ;;  %v909_v2 = vsel %vm2537_vm13, %v902_v34, %v2141_v26  ;;  %v916_v50 = vsel %vm2538_vm8, 0, %v902_v34  ;;  %v898_v26 = vsel %vm2002_vm10, %v888_v11, 0  ;;  %vm2550_vm10 = vmmov %vm2543_vm3 }
 0x224   :  { %v918_v53 = vsel %vm2539_vm9, %v916_v50, 0  ;;  %v919_v40 = vsel %vm2540_vm0, %v909_v2, 0  ;;  %v858_v60 = vsel %vm2541_vm11, %v848_v16, 0  ;;  %vm2546_vm7 = vcmask 130048   ;;  %vm2551_vm0 = vmmov %vm2543_vm3 }
 0x225   :  { %v1018_v49 = vrot.slane %v918_v53, 4  ;;  %v1019_v35 = vrot.slane %v919_v40, 4  ;;  %v1052_v43 = vsel %vm2531_vm4, %v858_v60, %v1013_v38  ;;  %vm2547_vm13 = vmmov %vm2546_vm7  ;;  %vm2548_vm8 = vcmask 138240  }
 0x226   :  { %1170 = vmatpush.bf16.msrb.mxu3 %v1052_v43  ;;  %vm2549_vm9 = vmmov %vm2548_vm8 }
 0x227   :  { %v1056_v14 = vsel %vm2543_vm3, %v897_v52, %v1018_v49  ;;  %v1060_v24 = vsel %vm2544_vm6, %v898_v26, %v1019_v35  ;;  %vm2552_vm11 = vmmov %vm2545_vm14 }
 0x228   :  { %1130 = vmatpush.bf16.msrb.mxu0 %v1056_v14  ;;  %1143 = vmatpush.bf16.msrb.mxu1 %v1060_v24 }
 0x229   :  { %1213 = vmatmul.msk.bf16.vlgmr.msrb.gmra.mxu3 %vm2545_vm14, %v1102_v51 }
 0x22a   :  { %v860_v30 = vpop.permute.xlu0 %859  ;;  %v839_v4 = vpop.permute.xlu1 %838 }
 0x22b   :  { %v867_v23 = vsel %vm2546_vm7, %v860_v30, %v2146_v48  ;;  %v874_v56 = vsel %vm2547_vm13, 0, %v860_v30  ;;  %v846_v57 = vsel %vm2548_vm8, %v839_v4, %v2152_v42  ;;  %v853_v47 = vsel %vm2549_vm9, 0, %v839_v4 }
 0x22c   :  { %v876_v25 = vsel %vm2016_vm1, %v874_v56, 0  ;;  %v877_v33 = vsel %vm2022_vm2, %v867_v23, 0  ;;  %v855_v59 = vsel %vm2028_vm12, %v853_v47, 0  ;;  %v856_v48 = vsel %vm2042_vm15, %v846_v57, 0  ;;  %vm2553_vm1 = vmmov %vm2552_vm11 }
 0x22d   :  { %v1010_v5 = vrot.slane %v876_v25, 4  ;;  %v1011_v0 = vrot.slane %v877_v33, 4 }
 0x22f   :  { %v1040_v13 = vsel %vm2550_vm10, %v855_v59, %v1010_v5  ;;  %v1044_v42 = vsel %vm2551_vm0, %v856_v48, %v1011_v0 }
 0x230   :  { %1131 = vmatpush.bf16.msrb.mxu0 %v1040_v13  ;;  %1144 = vmatpush.bf16.msrb.mxu1 %v1044_v42 }
 0x233   :  { %1210 = vmatmul.msk.bf16.vlgmr.msrb.gmra.mxu0 %vm2552_vm11, %v1102_v51  ;;  %1211 = vmatmul.msk.bf16.vlgmr.msrb.gmra.mxu1 %vm2553_vm1, %v1102_v51 }
 0x2a2   :  { %v1159_v44 = vpop.f32.mrf.mxu2 }
 0x2a3   :  { %v1160_v36 = vadd.f32 %v1159_v44, %v1107_v9 }
 0x2a5   :  { %v1178_v61 = vadd.f32 %v1160_v36, %v56_v6 }
 0x2a7   :  { %v1182_v41 = vmax.f32 %v1178_v61, 0.0 }
 0x2a9   :  { %1186 = vst [vmem:[#allocation7 + $0x10] sm:$0xff] %v1182_v41 }
 0x2aa   :  { %v1161_v39 = vpop.f32.mrf.mxu2 }
 0x2ac   :  { %v1172_v63 = vpop.f32.mrf.mxu3 }
 0x2ad   :  { %v1173_v1 = vadd.f32 %v1172_v63, %v1107_v9 }
 0x2af   :  { %v1179_v22 = vadd.f32 %v1173_v1, %v57_v32 }
 0x2b0   :  { %v1133_v18 = vpop.f32.mrf.mxu0  ;;  %v1146_v58 = vpop.f32.mrf.mxu1 }
 0x2b1   :  { %v1183_v45 = vmax.f32 %v1179_v22, 0.0  ;;  %v1134_v27 = vadd.f32 %v1133_v18, %v1107_v9  ;;  %v1147_v17 = vadd.f32 %v1146_v58, %v1107_v9 }
 0x2b3   :  { %1187 = vst [vmem:[#allocation7 + $0x18] sm:$0xff] %v1183_v45  ;;  %v1176_v62 = vadd.f32 %v1134_v27, %v54_v28  ;;  %v1177_v12 = vadd.f32 %v1147_v17, %v55_v46 }
 0x2b4   :  { %v1174_v10 = vpop.f32.mrf.mxu3 }
 0x2b5   :  { %v1180_v19 = vmax.f32 %v1176_v62, 0.0  ;;  %v1181_v3 = vmax.f32 %v1177_v12, 0.0 }
 0x2b7   :  { %1184 = vst [vmem:[#allocation7] sm:$0xff] %v1180_v19 }
 0x2b8   :  { %1185 = vst [vmem:[#allocation7 + $0x8] sm:$0xff] %v1181_v3  ;;  %v1135_v15 = vpop.f32.mrf.mxu0  ;;  %v1148_v29 = vpop.f32.mrf.mxu1 }
 0x2b9   :  { %1198 = dma.vmem_to_hbm [thread:$0]  %s1194_s20, 512, %s1196_s23, [#allocation4]  }
 0x2ba   :  { %1307 = dma.done.wait [#allocation4], 512  }
 0x2bb   :  { %1308 = vsyncadd [#allocation4], 4294966784 }
 0x2bc   :  { %1203 = vsyncpa [#allocation3], 1 }
 0x2bd   :  { %1204 = vsyncpa [#allocation6], 1 }
 0x2be   :  { %1205 = vsyncpa [#allocation4], 1 }

</bundles_post_ra>
